<compile_context>
chip_gen: v6e
topology: v6e:2x2x1
jax: 0.10.0
libtpu: 0.0.40
codegen_flags: <defaults>
</compile_context>

<pallas_src>
import functools
import numpy as np
import jax
import jax.numpy as jnp
from jax import lax
from jax.experimental import pallas as pl
from jax.experimental.pallas import tpu as pltpu

# ------------------------- model configuration (args) ------------------------
EMBED            = 32   # args_embedding_size
HIDDEN           = 32   # args_hidden_size (FF hidden width)
GAT_LAYERS       = 1    # args_gat_layer_num
INTERNAL_HOLDER  = 8    # args_internal_node_holder
INTERNAL_LEN     = 6    # args_internal_node_length
LEAF_HOLDER      = 8    # args_leaf_node_holder
LEAF_LEN         = 8    # leaf-node raw feature length
CUR_LEN          = 6    # current-box raw feature length
NODE_FEAT        = 9    # raw per-node feature length, feature[-1] = validity
N_NODES          = INTERNAL_HOLDER + LEAF_HOLDER + 1


# ------------------------------ fused Pallas kernel ---------------------------
def _drl_gat_fused_kernel(items_ref, nmask_ref, lmask_ref, w_emb_ref, b_node_ref,
                          wqkv_ref, w1_ref, b1_ref, w2_ref, b2_ref, w_dec_ref,
                          out_ref, *, n_layers, n_internal, n_leaf, embed):
    """Embeddings + GAT encoder + pointer decoder + critic for BT batch rows."""
    BT = items_ref.shape[0]
    N = items_ref.shape[1]
    E = embed
    I = n_internal
    L = n_leaf
    neg = jnp.float32(-1e9)

    # Weights loaded once per grid step (constant index_map -> DMA'd once).
    w_emb = w_emb_ref[...]          # (F, 3E)   [W_int | W_leaf | W_cur], normFactor folded
    b_node = b_node_ref[...]        # (N, E)    per-node-type bias
    w_dec = w_dec_ref[...]          # (E+1, E+1) [w_proj*scale | w_critic ; 0 | b_critic]
    nmask_all = nmask_ref[...]      # (BT, N)   node validity (attention key mask)
    lmask_all = lmask_ref[...]      # (BT, L)   leaf validity (action mask)

    ridx = lax.broadcasted_iota(jnp.int32, (N, E), 0)   # node index on sublanes
    ones11 = jnp.ones((1, 1), jnp.float32)

    rows = []
    for bi in range(BT):            # unrolled over the batch tile
        x = items_ref[bi]                                               # (N, F)

        # ----- per-node-type embeddings: single packed matmul + row-type select
        emb = jnp.dot(x, w_emb, preferred_element_type=jnp.float32)     # (N, 3E)
        h = jnp.where(ridx < I, emb[:, :E],
                      jnp.where(ridx < I + L, emb[:, E:2 * E], emb[:, 2 * E:3 * E]))
        h = h + b_node                                                  # (N, E)

        kmask = nmask_all[bi:bi + 1, :] > 0.5                           # (1, N)

        # ----- single-head GAT encoder layers (attention + skip + FF + skip)
        for l in range(n_layers):
            # packed [wq*1/sqrt(E) | wk | wv@wo]
            qkv = jnp.dot(h, wqkv_ref[l], preferred_element_type=jnp.float32)  # (N, 3E)
            q = qkv[:, :E]
            k = qkv[:, E:2 * E]
            v = qkv[:, 2 * E:3 * E]          # already projected through wv @ wo
            scores = lax.dot_general(q, k, (((1,), (1,)), ((), ())),
                                     preferred_element_type=jnp.float32)       # (N, N)
            scores = jnp.where(kmask, scores, neg)                      # mask invalid keys
            m = jnp.max(scores, axis=-1, keepdims=True)
            e = jnp.exp(scores - m)
            s = jnp.sum(e, axis=-1, keepdims=True)
            attn = e * pl.reciprocal(s, approx=True)
            h1 = h + jnp.dot(attn, v, preferred_element_type=jnp.float32)      # skip
            ff = jnp.maximum(
                jnp.dot(h1, w1_ref[l], preferred_element_type=jnp.float32) + b1_ref[l],
                0.0)
            ff = jnp.dot(ff, w2_ref[l], preferred_element_type=jnp.float32) + b2_ref[l]
            h = h1 + ff                                                 # skip
            # TODO(synk): original encoder optionally applies batch/instance norm here.

        # ----- pointer decoder over leaf nodes + fused critic head
        # TODO(synk): mean is over all N nodes (incl. padding), as in the prior version.
        graph = jnp.mean(h, axis=0, keepdims=True)                      # (1, E)
        graph1 = jnp.concatenate([graph, ones11], axis=-1)              # (1, E+1)
        cv = jnp.dot(graph1, w_dec, preferred_element_type=jnp.float32)  # (1, E+1)
        context = cv[:, :E]                                             # graph @ (w_proj*scale)
        value = cv[:, E:E + 1]                                          # critic value (+bias)

        leaves = h[I:I + L, :]                                          # (L, E)
        logits = lax.dot_general(context, leaves, (((1,), (1,)), ((), ())),
                                 preferred_element_type=jnp.float32)    # (1, L)
        logits = 10.0 * jnp.tanh(logits)                                # tanh clipping
        lmask = lmask_all[bi:bi + 1, :] > 0.5
        logits = jnp.where(lmask, logits, neg)
        m2 = jnp.max(logits, axis=-1, keepdims=True)
        e2 = jnp.exp(logits - m2)
        s2 = jnp.sum(e2, axis=-1, keepdims=True)
        probs = e2 * pl.reciprocal(s2, approx=True)
        logp = (logits - m2) - jnp.log(s2)
        ent = -jnp.sum(jnp.where(lmask, probs * logp, 0.0),
                       axis=-1, keepdims=True)                          # (1, 1)

        rows.append(jnp.concatenate([probs, ent, value], axis=-1))      # (1, L+2)

    # single lane-packed output slab: [probs(0:L) | entropy | value]
    out_ref[...] = jnp.concatenate(rows, axis=0)                        # (BT, L+2)


# ------------------------------ parameter init --------------------------------
def _init_linear(key, fan_in, fan_out):
    # mimic torch.nn.Linear default init: U(-1/sqrt(fan_in), 1/sqrt(fan_in))
    k1, k2 = jax.random.split(key)
    bound = 1.0 / np.sqrt(fan_in)
    w = jax.random.uniform(k1, (fan_in, fan_out), jnp.float32, -bound, bound)
    b = jax.random.uniform(k2, (1, fan_out), jnp.float32, -bound, bound)
    return w, b


def init_params(key):
    keys = jax.random.split(key, 8 + 10 * GAT_LAYERS)
    ki = iter(range(len(keys)))
    params = {}
    params["w_int"], params["b_int"] = _init_linear(keys[next(ki)], INTERNAL_LEN, EMBED)
    params["w_leaf"], params["b_leaf"] = _init_linear(keys[next(ki)], LEAF_LEN, EMBED)
    params["w_cur"], params["b_cur"] = _init_linear(keys[next(ki)], CUR_LEN, EMBED)
    layers = []
    for _ in range(GAT_LAYERS):
        lp = {}
        lp["wq"], _ = _init_linear(keys[next(ki)], EMBED, EMBED)
        lp["wk"], _ = _init_linear(keys[next(ki)], EMBED, EMBED)
        lp["wv"], _ = _init_linear(keys[next(ki)], EMBED, EMBED)
        lp["wo"], _ = _init_linear(keys[next(ki)], EMBED, EMBED)
        lp["w1"], lp["b1"] = _init_linear(keys[next(ki)], EMBED, HIDDEN)
        lp["w2"], lp["b2"] = _init_linear(keys[next(ki)], HIDDEN, EMBED)
        layers.append(lp)
    params["layers"] = layers
    params["w_proj"], _ = _init_linear(keys[next(ki)], EMBED, EMBED)  # no bias
    # critic: orthogonal init with gain sqrt(2), bias 0 (as in DRL_GAT.__init__)
    wc = jax.random.normal(keys[next(ki)], (EMBED, 1), jnp.float32)
    qc, _ = jnp.linalg.qr(wc)                       # orthonormal column
    params["w_critic"] = qc * np.float32(np.sqrt(2.0))
    params["b_critic"] = jnp.zeros((1, 1), jnp.float32)
    return params


# ------------------------------- forward pass ---------------------------------
def drl_gat_forward(params, items, normFactor=1.0):
    """Returns (o, p, dist_entropy, values) like DRL_GAT.forward (deterministic)."""
    B, N, F = items.shape
    I, L, E, H = INTERNAL_HOLDER, LEAF_HOLDER, EMBED, HIDDEN
    scale = jnp.float32(1.0 / np.sqrt(E))

    # ---- trace-time weight packing / folding (tiny XLA ops, outside the kernel)
    def pad_rows(w):
        return jnp.pad(w, ((0, F - w.shape[0]), (0, 0)))

    # normFactor scales raw features -> folded into the embedding weights.
    w_emb = jnp.concatenate([pad_rows(params["w_int"]),
                             pad_rows(params["w_leaf"]),
                             pad_rows(params["w_cur"])], axis=1) * jnp.float32(normFactor)
    b_node = jnp.concatenate([jnp.tile(params["b_int"], (I, 1)),
                              jnp.tile(params["b_leaf"], (L, 1)),
                              params["b_cur"]], axis=0)                       # (N, E)
    # packed attention weight per layer: [wq * 1/sqrt(E) | wk | wv @ wo]
    wqkv = jnp.stack([jnp.concatenate(
        [lp["wq"] * scale, lp["wk"], jnp.dot(lp["wv"], lp["wo"])], axis=1)
        for lp in params["layers"]], axis=0)                                   # (Lyr, E, 3E)
    w1 = jnp.stack([lp["w1"] for lp in params["layers"]], axis=0)
    b1 = jnp.stack([lp["b1"] for lp in params["layers"]], axis=0)
    w2 = jnp.stack([lp["w2"] for lp in params["layers"]], axis=0)
    b2 = jnp.stack([lp["b2"] for lp in params["layers"]], axis=0)
    # packed decoder/critic weight (critic bias folded via a constant-1 feature)
    w_dec = jnp.concatenate([
        jnp.concatenate([params["w_proj"] * scale, params["w_critic"]], axis=1),
        jnp.concatenate([jnp.zeros((1, E), jnp.float32), params["b_critic"]], axis=1)],
        axis=0)                                                                # (E+1, E+1)

    valid = items[:, :, -1]                       # (B, N) node validity (unscaled)
    leaf_mask = valid[:, I:I + L]                 # (B, L)

    # ---- batch tiling: BT rows per grid step, batch axis stays "parallel"
    bt = min(8, B)
    b_pad = ((B + bt - 1) // bt) * bt
    if b_pad != B:
        items = jnp.pad(items, ((0, b_pad - B), (0, 0), (0, 0)))
        valid = jnp.pad(valid, ((0, b_pad - B), (0, 0)))
        leaf_mask = jnp.pad(leaf_mask, ((0, b_pad - B), (0, 0)))

    out_w = L + 2
    kern = functools.partial(_drl_gat_fused_kernel, n_layers=GAT_LAYERS,
                             n_internal=I, n_leaf=L, embed=E)
    packed = pl.pallas_call(
        kern,
        out_shape=jax.ShapeDtypeStruct((b_pad, out_w), jnp.float32),
        grid=(b_pad // bt,),
        in_specs=[
            pl.BlockSpec((bt, N, F), lambda i: (i, 0, 0)),          # items
            pl.BlockSpec((bt, N), lambda i: (i, 0)),                # node mask
            pl.BlockSpec((bt, L), lambda i: (i, 0)),                # leaf mask
            pl.BlockSpec((F, 3 * E), lambda i: (0, 0)),             # packed embed W
            pl.BlockSpec((N, E), lambda i: (0, 0)),                 # per-node bias
            pl.BlockSpec((GAT_LAYERS, E, 3 * E), lambda i: (0, 0, 0)),
            pl.BlockSpec((GAT_LAYERS, E, H), lambda i: (0, 0, 0)),
            pl.BlockSpec((GAT_LAYERS, 1, H), lambda i: (0, 0, 0)),
            pl.BlockSpec((GAT_LAYERS, H, E), lambda i: (0, 0, 0)),
            pl.BlockSpec((GAT_LAYERS, 1, E), lambda i: (0, 0, 0)),
            pl.BlockSpec((E + 1, E + 1), lambda i: (0, 0)),         # packed decoder W
        ],
        out_specs=pl.BlockSpec((bt, out_w), lambda i: (i, 0)),
        compiler_params=pltpu.CompilerParams(dimension_semantics=("parallel",)),
    )(items, valid, leaf_mask, w_emb, b_node, wqkv, w1, b1, w2, b2, w_dec)

    packed = packed[:B]
    probs = packed[:, :L]                                           # (B, L)
    dist_entropy = packed[:, L]                                     # (B,)
    values = packed[:, L + 1:L + 2]                                 # (B, 1)

    # deterministic action selection; TODO(synk): stochastic sampling path
    # (deterministic=False) of the actor is not reproduced here.
    o = jnp.argmax(probs, axis=-1)                                  # (B,)
    p = jnp.take_along_axis(probs, o[:, None], axis=1)[:, 0]        # (B,)
    return o, p, dist_entropy, values


# ----------------------------------- main --------------------------------------
if __name__ == "__main__":
    key = jax.random.PRNGKey(0)
    kp, kx = jax.random.split(key)
    params = init_params(kp)

    B = 2
    items = jax.random.uniform(kx, (B, N_NODES, NODE_FEAT), jnp.float32)
    items = items.at[:, :, -1].set(1.0)        # mark every node / leaf as valid

    fwd = jax.jit(drl_gat_forward)
    out = jax.block_until_ready(fwd(params, items))
    o, p, dist_entropy, values = out
    assert o.shape == (B,)
    assert p.shape == (B,)
    assert dist_entropy.shape == (B,)
    assert values.shape == (B, 1)
    assert np.all(np.isfinite(np.asarray(p)))
    assert np.all(np.isfinite(np.asarray(values)))
    print("KERNEL_OK")
</pallas_src>

<mosaic_0001>
module attributes {stable_mosaic.version = 11 : i64} {
  func.func @_drl_gat_fused_kernel(%arg0: i32, %arg1: memref<2x17x9xf32, #tpu.memory_space<vmem>>, %arg2: memref<2x17xf32, #tpu.memory_space<vmem>>, %arg3: memref<2x8xf32, #tpu.memory_space<vmem>>, %arg4: memref<9x96xf32, #tpu.memory_space<vmem>>, %arg5: memref<17x32xf32, #tpu.memory_space<vmem>>, %arg6: memref<1x32x96xf32, #tpu.memory_space<vmem>>, %arg7: memref<1x32x32xf32, #tpu.memory_space<vmem>>, %arg8: memref<1x1x32xf32, #tpu.memory_space<vmem>>, %arg9: memref<1x32x32xf32, #tpu.memory_space<vmem>>, %arg10: memref<1x1x32xf32, #tpu.memory_space<vmem>>, %arg11: memref<33x33xf32, #tpu.memory_space<vmem>>, %arg12: memref<2x10xf32, #tpu.memory_space<vmem>>) attributes {dimension_semantics = [#tpu.dimension_semantics<parallel>], iteration_bounds = array<i64: 1>, scalar_prefetch = 0 : i64, scratch_operands = 0 : i64, tpu.core_type = #tpu.core_type<tc>, window_params = [{transform_indices = @transform_0, window_bounds = array<i64: 2, 17, 9>}, {transform_indices = @transform_1, window_bounds = array<i64: 2, 17>}, {transform_indices = @transform_2, window_bounds = array<i64: 2, 8>}, {pipeline_mode = #tpu.pipeline_mode<synchronous>, transform_indices = @transform_3, window_bounds = array<i64: 9, 96>}, {pipeline_mode = #tpu.pipeline_mode<synchronous>, transform_indices = @transform_4, window_bounds = array<i64: 17, 32>}, {pipeline_mode = #tpu.pipeline_mode<synchronous>, transform_indices = @transform_5, window_bounds = array<i64: 1, 32, 96>}, {pipeline_mode = #tpu.pipeline_mode<synchronous>, transform_indices = @transform_6, window_bounds = array<i64: 1, 32, 32>}, {pipeline_mode = #tpu.pipeline_mode<synchronous>, transform_indices = @transform_7, window_bounds = array<i64: 1, 1, 32>}, {pipeline_mode = #tpu.pipeline_mode<synchronous>, transform_indices = @transform_8, window_bounds = array<i64: 1, 32, 32>}, {pipeline_mode = #tpu.pipeline_mode<synchronous>, transform_indices = @transform_9, window_bounds = array<i64: 1, 1, 32>}, {pipeline_mode = #tpu.pipeline_mode<synchronous>, transform_indices = @transform_10, window_bounds = array<i64: 33, 33>}, {transform_indices = @transform_11, window_bounds = array<i64: 2, 10>}]} {
    %c0 = arith.constant 0 : index
    %c0_0 = arith.constant 0 : index
    %0 = vector.load %arg4[%c0, %c0_0] : memref<9x96xf32, #tpu.memory_space<vmem>>, vector<9x96xf32>
    %c0_1 = arith.constant 0 : index
    %c0_2 = arith.constant 0 : index
    %1 = vector.load %arg5[%c0_1, %c0_2] : memref<17x32xf32, #tpu.memory_space<vmem>>, vector<17x32xf32>
    %c0_3 = arith.constant 0 : index
    %c0_4 = arith.constant 0 : index
    %2 = vector.load %arg11[%c0_3, %c0_4] : memref<33x33xf32, #tpu.memory_space<vmem>>, vector<33x33xf32>
    %c0_5 = arith.constant 0 : index
    %c0_6 = arith.constant 0 : index
    %3 = vector.load %arg2[%c0_5, %c0_6] : memref<2x17xf32, #tpu.memory_space<vmem>>, vector<2x17xf32>
    %c0_7 = arith.constant 0 : index
    %c0_8 = arith.constant 0 : index
    %4 = vector.load %arg3[%c0_7, %c0_8] : memref<2x8xf32, #tpu.memory_space<vmem>>, vector<2x8xf32>
    %5 = tpu.iota {dimensions = array<i32: 0>} : vector<17x32xi32>
    %cst = arith.constant 1.000000e+00 : f32
    %6 = vector.broadcast %cst : f32 to vector<1x1xf32>
    %c0_9 = arith.constant 0 : index
    %c0_10 = arith.constant 0 : index
    %c0_11 = arith.constant 0 : index
    %7 = vector.load %arg1[%c0_9, %c0_10, %c0_11] : memref<2x17x9xf32, #tpu.memory_space<vmem>>, vector<1x17x9xf32>
    %8 = vector.shape_cast %7 : vector<1x17x9xf32> to vector<17x9xf32>
    %cst_12 = arith.constant dense<0.000000e+00> : vector<17x96xf32>
    %9 = tpu.matmul %8, %0, %cst_12 {dimension_numbers = #tpu.dot_dimension_numbers<[1], [0], [0], [1], [0, 0, 1, 1], [], []>} : vector<17x9xf32>, vector<9x96xf32>, vector<17x96xf32> -> vector<17x96xf32>
    %c8_i32 = arith.constant 8 : i32
    %10 = vector.broadcast %c8_i32 : i32 to vector<17x32xi32>
    %11 = arith.cmpi slt, %5, %10 : vector<17x32xi32>
    %12 = vector.extract_strided_slice %9 {offsets = [0, 0], sizes = [17, 32], strides = [1, 1]} : vector<17x96xf32> to vector<17x32xf32>
    %c16_i32 = arith.constant 16 : i32
    %13 = vector.broadcast %c16_i32 : i32 to vector<17x32xi32>
    %14 = arith.cmpi slt, %5, %13 : vector<17x32xi32>
    %15 = vector.extract_strided_slice %9 {offsets = [0, 32], sizes = [17, 32], strides = [1, 1]} : vector<17x96xf32> to vector<17x32xf32>
    %16 = vector.extract_strided_slice %9 {offsets = [0, 64], sizes = [17, 32], strides = [1, 1]} : vector<17x96xf32> to vector<17x32xf32>
    %17 = arith.select %14, %15, %16 : vector<17x32xi1>, vector<17x32xf32>
    %18 = arith.select %11, %12, %17 : vector<17x32xi1>, vector<17x32xf32>
    %19 = arith.addf %18, %1 : vector<17x32xf32>
    %20 = vector.extract_strided_slice %3 {offsets = [0, 0], sizes = [1, 17], strides = [1, 1]} : vector<2x17xf32> to vector<1x17xf32>
    %cst_13 = arith.constant 5.000000e-01 : f32
    %21 = vector.broadcast %cst_13 : f32 to vector<1x17xf32>
    %22 = arith.cmpf ogt, %20, %21 : vector<1x17xf32>
    %c0_14 = arith.constant 0 : index
    %c0_15 = arith.constant 0 : index
    %c0_16 = arith.constant 0 : index
    %23 = vector.load %arg6[%c0_14, %c0_15, %c0_16] : memref<1x32x96xf32, #tpu.memory_space<vmem>>, vector<1x32x96xf32>
    %24 = vector.shape_cast %23 : vector<1x32x96xf32> to vector<32x96xf32>
    %cst_17 = arith.constant dense<0.000000e+00> : vector<17x96xf32>
    %25 = tpu.matmul %19, %24, %cst_17 {dimension_numbers = #tpu.dot_dimension_numbers<[1], [0], [0], [1], [0, 0, 1, 1], [], []>} : vector<17x32xf32>, vector<32x96xf32>, vector<17x96xf32> -> vector<17x96xf32>
    %26 = vector.extract_strided_slice %25 {offsets = [0, 0], sizes = [17, 32], strides = [1, 1]} : vector<17x96xf32> to vector<17x32xf32>
    %27 = vector.extract_strided_slice %25 {offsets = [0, 32], sizes = [17, 32], strides = [1, 1]} : vector<17x96xf32> to vector<17x32xf32>
    %28 = vector.extract_strided_slice %25 {offsets = [0, 64], sizes = [17, 32], strides = [1, 1]} : vector<17x96xf32> to vector<17x32xf32>
    %cst_18 = arith.constant dense<0.000000e+00> : vector<17x17xf32>
    %29 = tpu.matmul %26, %27, %cst_18 {dimension_numbers = #tpu.dot_dimension_numbers<[1], [1], [0], [0], [0, 0, 1, 0], [], []>} : vector<17x32xf32>, vector<17x32xf32>, vector<17x17xf32> -> vector<17x17xf32>
    %cst_19 = arith.constant -1.000000e+09 : f32
    %30 = vector.shape_cast %22 : vector<1x17xi1> to vector<1x17xi1>
    %31 = vector.broadcast %30 : vector<1x17xi1> to vector<17x17xi1>
    %32 = vector.broadcast %cst_19 : f32 to vector<17x17xf32>
    %33 = arith.select %31, %29, %32 : vector<17x17xi1>, vector<17x17xf32>
    %cst_20 = arith.constant dense<0xFF800000> : vector<17xf32>
    %34 = vector.multi_reduction <maximumf>, %33, %cst_20 [1] : vector<17x17xf32> to vector<17xf32>
    %35 = vector.shape_cast %34 : vector<17xf32> to vector<17x1xf32>
    %36 = vector.broadcast %35 : vector<17x1xf32> to vector<17x17xf32>
    %37 = arith.subf %33, %36 : vector<17x17xf32>
    %38 = math.exp %37 : vector<17x17xf32>
    %cst_21 = arith.constant dense<0.000000e+00> : vector<17xf32>
    %39 = vector.multi_reduction <add>, %38, %cst_21 [1] : vector<17x17xf32> to vector<17xf32>
    %40 = vector.shape_cast %39 : vector<17xf32> to vector<17x1xf32>
    %41 = tpu.reciprocal %40 {approx = true} : vector<17x1xf32> -> vector<17x1xf32>
    %42 = vector.broadcast %41 : vector<17x1xf32> to vector<17x17xf32>
    %43 = arith.mulf %38, %42 : vector<17x17xf32>
    %cst_22 = arith.constant dense<0.000000e+00> : vector<17x32xf32>
    %44 = tpu.matmul %43, %28, %cst_22 {dimension_numbers = #tpu.dot_dimension_numbers<[1], [0], [0], [1], [0, 0, 1, 1], [], []>} : vector<17x17xf32>, vector<17x32xf32>, vector<17x32xf32> -> vector<17x32xf32>
    %45 = arith.addf %19, %44 : vector<17x32xf32>
    %c0_23 = arith.constant 0 : index
    %c0_24 = arith.constant 0 : index
    %c0_25 = arith.constant 0 : index
    %46 = vector.load %arg7[%c0_23, %c0_24, %c0_25] : memref<1x32x32xf32, #tpu.memory_space<vmem>>, vector<1x32x32xf32>
    %47 = vector.shape_cast %46 : vector<1x32x32xf32> to vector<32x32xf32>
    %cst_26 = arith.constant dense<0.000000e+00> : vector<17x32xf32>
    %48 = tpu.matmul %45, %47, %cst_26 {dimension_numbers = #tpu.dot_dimension_numbers<[1], [0], [0], [1], [0, 0, 1, 1], [], []>} : vector<17x32xf32>, vector<32x32xf32>, vector<17x32xf32> -> vector<17x32xf32>
    %c0_27 = arith.constant 0 : index
    %c0_28 = arith.constant 0 : index
    %c0_29 = arith.constant 0 : index
    %49 = vector.load %arg8[%c0_27, %c0_28, %c0_29] : memref<1x1x32xf32, #tpu.memory_space<vmem>>, vector<1x1x32xf32>
    %50 = vector.shape_cast %49 : vector<1x1x32xf32> to vector<1x32xf32>
    %51 = vector.broadcast %50 : vector<1x32xf32> to vector<17x32xf32>
    %52 = arith.addf %48, %51 : vector<17x32xf32>
    %cst_30 = arith.constant 0.000000e+00 : f32
    %53 = vector.broadcast %cst_30 : f32 to vector<17x32xf32>
    %54 = arith.maximumf %52, %53 : vector<17x32xf32>
    %c0_31 = arith.constant 0 : index
    %c0_32 = arith.constant 0 : index
    %c0_33 = arith.constant 0 : index
    %55 = vector.load %arg9[%c0_31, %c0_32, %c0_33] : memref<1x32x32xf32, #tpu.memory_space<vmem>>, vector<1x32x32xf32>
    %56 = vector.shape_cast %55 : vector<1x32x32xf32> to vector<32x32xf32>
    %cst_34 = arith.constant dense<0.000000e+00> : vector<17x32xf32>
    %57 = tpu.matmul %54, %56, %cst_34 {dimension_numbers = #tpu.dot_dimension_numbers<[1], [0], [0], [1], [0, 0, 1, 1], [], []>} : vector<17x32xf32>, vector<32x32xf32>, vector<17x32xf32> -> vector<17x32xf32>
    %c0_35 = arith.constant 0 : index
    %c0_36 = arith.constant 0 : index
    %c0_37 = arith.constant 0 : index
    %58 = vector.load %arg10[%c0_35, %c0_36, %c0_37] : memref<1x1x32xf32, #tpu.memory_space<vmem>>, vector<1x1x32xf32>
    %59 = vector.shape_cast %58 : vector<1x1x32xf32> to vector<1x32xf32>
    %60 = vector.broadcast %59 : vector<1x32xf32> to vector<17x32xf32>
    %61 = arith.addf %57, %60 : vector<17x32xf32>
    %62 = arith.addf %45, %61 : vector<17x32xf32>
    %cst_38 = arith.constant dense<0.000000e+00> : vector<32xf32>
    %63 = vector.multi_reduction <add>, %62, %cst_38 [0] : vector<17x32xf32> to vector<32xf32>
    %64 = vector.shape_cast %63 : vector<32xf32> to vector<1x32xf32>
    %cst_39 = arith.constant 1.700000e+01 : f32
    %65 = vector.broadcast %cst_39 : f32 to vector<1x32xf32>
    %66 = arith.divf %64, %65 : vector<1x32xf32>
    %67 = tpu.concatenate %66, %6 in 1 : vector<1x32xf32>, vector<1x1xf32> -> vector<1x33xf32>
    %cst_40 = arith.constant dense<0.000000e+00> : vector<1x33xf32>
    %68 = tpu.matmul %67, %2, %cst_40 {dimension_numbers = #tpu.dot_dimension_numbers<[1], [0], [0], [1], [0, 0, 1, 1], [], []>} : vector<1x33xf32>, vector<33x33xf32>, vector<1x33xf32> -> vector<1x33xf32>
    %69 = vector.extract_strided_slice %68 {offsets = [0, 0], sizes = [1, 32], strides = [1, 1]} : vector<1x33xf32> to vector<1x32xf32>
    %70 = vector.extract_strided_slice %68 {offsets = [0, 32], sizes = [1, 1], strides = [1, 1]} : vector<1x33xf32> to vector<1x1xf32>
    %71 = vector.extract_strided_slice %62 {offsets = [8, 0], sizes = [8, 32], strides = [1, 1]} : vector<17x32xf32> to vector<8x32xf32>
    %cst_41 = arith.constant dense<0.000000e+00> : vector<1x8xf32>
    %72 = tpu.matmul %69, %71, %cst_41 {dimension_numbers = #tpu.dot_dimension_numbers<[1], [1], [0], [0], [0, 0, 1, 0], [], []>} : vector<1x32xf32>, vector<8x32xf32>, vector<1x8xf32> -> vector<1x8xf32>
    %73 = math.tanh %72 : vector<1x8xf32>
    %cst_42 = arith.constant 1.000000e+01 : f32
    %74 = vector.broadcast %cst_42 : f32 to vector<1x8xf32>
    %75 = arith.mulf %74, %73 : vector<1x8xf32>
    %76 = vector.extract_strided_slice %4 {offsets = [0, 0], sizes = [1, 8], strides = [1, 1]} : vector<2x8xf32> to vector<1x8xf32>
    %cst_43 = arith.constant 5.000000e-01 : f32
    %77 = vector.broadcast %cst_43 : f32 to vector<1x8xf32>
    %78 = arith.cmpf ogt, %76, %77 : vector<1x8xf32>
    %cst_44 = arith.constant -1.000000e+09 : f32
    %79 = vector.broadcast %cst_44 : f32 to vector<1x8xf32>
    %80 = arith.select %78, %75, %79 : vector<1x8xi1>, vector<1x8xf32>
    %cst_45 = arith.constant dense<0xFF800000> : vector<1xf32>
    %81 = vector.multi_reduction <maximumf>, %80, %cst_45 [1] : vector<1x8xf32> to vector<1xf32>
    %82 = vector.shape_cast %81 : vector<1xf32> to vector<1x1xf32>
    %83 = vector.broadcast %82 : vector<1x1xf32> to vector<1x8xf32>
    %84 = arith.subf %80, %83 : vector<1x8xf32>
    %85 = math.exp %84 : vector<1x8xf32>
    %cst_46 = arith.constant dense<0.000000e+00> : vector<1xf32>
    %86 = vector.multi_reduction <add>, %85, %cst_46 [1] : vector<1x8xf32> to vector<1xf32>
    %87 = vector.shape_cast %86 : vector<1xf32> to vector<1x1xf32>
    %88 = tpu.reciprocal %87 {approx = true} : vector<1x1xf32> -> vector<1x1xf32>
    %89 = vector.broadcast %88 : vector<1x1xf32> to vector<1x8xf32>
    %90 = arith.mulf %85, %89 : vector<1x8xf32>
    %91 = vector.broadcast %82 : vector<1x1xf32> to vector<1x8xf32>
    %92 = arith.subf %80, %91 : vector<1x8xf32>
    %93 = math.log %87 : vector<1x1xf32>
    %94 = vector.broadcast %93 : vector<1x1xf32> to vector<1x8xf32>
    %95 = arith.subf %92, %94 : vector<1x8xf32>
    %96 = arith.mulf %90, %95 : vector<1x8xf32>
    %cst_47 = arith.constant 0.000000e+00 : f32
    %97 = vector.broadcast %cst_47 : f32 to vector<1x8xf32>
    %98 = arith.select %78, %96, %97 : vector<1x8xi1>, vector<1x8xf32>
    %cst_48 = arith.constant dense<0.000000e+00> : vector<1xf32>
    %99 = vector.multi_reduction <add>, %98, %cst_48 [1] : vector<1x8xf32> to vector<1xf32>
    %100 = vector.shape_cast %99 : vector<1xf32> to vector<1x1xf32>
    %cst_49 = arith.constant 0.000000e+00 : f32
    %101 = vector.broadcast %cst_49 : f32 to vector<1x1xf32>
    %102 = arith.subf %101, %100 : vector<1x1xf32>
    %103 = tpu.concatenate %90, %102, %70 in 1 : vector<1x8xf32>, vector<1x1xf32>, vector<1x1xf32> -> vector<1x10xf32>
    %c1 = arith.constant 1 : index
    %c0_50 = arith.constant 0 : index
    %c0_51 = arith.constant 0 : index
    %104 = vector.load %arg1[%c1, %c0_50, %c0_51] : memref<2x17x9xf32, #tpu.memory_space<vmem>>, vector<1x17x9xf32>
    %105 = vector.shape_cast %104 : vector<1x17x9xf32> to vector<17x9xf32>
    %cst_52 = arith.constant dense<0.000000e+00> : vector<17x96xf32>
    %106 = tpu.matmul %105, %0, %cst_52 {dimension_numbers = #tpu.dot_dimension_numbers<[1], [0], [0], [1], [0, 0, 1, 1], [], []>} : vector<17x9xf32>, vector<9x96xf32>, vector<17x96xf32> -> vector<17x96xf32>
    %c8_i32_53 = arith.constant 8 : i32
    %107 = vector.broadcast %c8_i32_53 : i32 to vector<17x32xi32>
    %108 = arith.cmpi slt, %5, %107 : vector<17x32xi32>
    %109 = vector.extract_strided_slice %106 {offsets = [0, 0], sizes = [17, 32], strides = [1, 1]} : vector<17x96xf32> to vector<17x32xf32>
    %c16_i32_54 = arith.constant 16 : i32
    %110 = vector.broadcast %c16_i32_54 : i32 to vector<17x32xi32>
    %111 = arith.cmpi slt, %5, %110 : vector<17x32xi32>
    %112 = vector.extract_strided_slice %106 {offsets = [0, 32], sizes = [17, 32], strides = [1, 1]} : vector<17x96xf32> to vector<17x32xf32>
    %113 = vector.extract_strided_slice %106 {offsets = [0, 64], sizes = [17, 32], strides = [1, 1]} : vector<17x96xf32> to vector<17x32xf32>
    %114 = arith.select %111, %112, %113 : vector<17x32xi1>, vector<17x32xf32>
    %115 = arith.select %108, %109, %114 : vector<17x32xi1>, vector<17x32xf32>
    %116 = arith.addf %115, %1 : vector<17x32xf32>
    %117 = vector.extract_strided_slice %3 {offsets = [1, 0], sizes = [1, 17], strides = [1, 1]} : vector<2x17xf32> to vector<1x17xf32>
    %cst_55 = arith.constant 5.000000e-01 : f32
    %118 = vector.broadcast %cst_55 : f32 to vector<1x17xf32>
    %119 = arith.cmpf ogt, %117, %118 : vector<1x17xf32>
    %c0_56 = arith.constant 0 : index
    %c0_57 = arith.constant 0 : index
    %c0_58 = arith.constant 0 : index
    %120 = vector.load %arg6[%c0_56, %c0_57, %c0_58] : memref<1x32x96xf32, #tpu.memory_space<vmem>>, vector<1x32x96xf32>
    %121 = vector.shape_cast %120 : vector<1x32x96xf32> to vector<32x96xf32>
    %cst_59 = arith.constant dense<0.000000e+00> : vector<17x96xf32>
    %122 = tpu.matmul %116, %121, %cst_59 {dimension_numbers = #tpu.dot_dimension_numbers<[1], [0], [0], [1], [0, 0, 1, 1], [], []>} : vector<17x32xf32>, vector<32x96xf32>, vector<17x96xf32> -> vector<17x96xf32>
    %123 = vector.extract_strided_slice %122 {offsets = [0, 0], sizes = [17, 32], strides = [1, 1]} : vector<17x96xf32> to vector<17x32xf32>
    %124 = vector.extract_strided_slice %122 {offsets = [0, 32], sizes = [17, 32], strides = [1, 1]} : vector<17x96xf32> to vector<17x32xf32>
    %125 = vector.extract_strided_slice %122 {offsets = [0, 64], sizes = [17, 32], strides = [1, 1]} : vector<17x96xf32> to vector<17x32xf32>
    %cst_60 = arith.constant dense<0.000000e+00> : vector<17x17xf32>
    %126 = tpu.matmul %123, %124, %cst_60 {dimension_numbers = #tpu.dot_dimension_numbers<[1], [1], [0], [0], [0, 0, 1, 0], [], []>} : vector<17x32xf32>, vector<17x32xf32>, vector<17x17xf32> -> vector<17x17xf32>
    %cst_61 = arith.constant -1.000000e+09 : f32
    %127 = vector.shape_cast %119 : vector<1x17xi1> to vector<1x17xi1>
    %128 = vector.broadcast %127 : vector<1x17xi1> to vector<17x17xi1>
    %129 = vector.broadcast %cst_61 : f32 to vector<17x17xf32>
    %130 = arith.select %128, %126, %129 : vector<17x17xi1>, vector<17x17xf32>
    %cst_62 = arith.constant dense<0xFF800000> : vector<17xf32>
    %131 = vector.multi_reduction <maximumf>, %130, %cst_62 [1] : vector<17x17xf32> to vector<17xf32>
    %132 = vector.shape_cast %131 : vector<17xf32> to vector<17x1xf32>
    %133 = vector.broadcast %132 : vector<17x1xf32> to vector<17x17xf32>
    %134 = arith.subf %130, %133 : vector<17x17xf32>
    %135 = math.exp %134 : vector<17x17xf32>
    %cst_63 = arith.constant dense<0.000000e+00> : vector<17xf32>
    %136 = vector.multi_reduction <add>, %135, %cst_63 [1] : vector<17x17xf32> to vector<17xf32>
    %137 = vector.shape_cast %136 : vector<17xf32> to vector<17x1xf32>
    %138 = tpu.reciprocal %137 {approx = true} : vector<17x1xf32> -> vector<17x1xf32>
    %139 = vector.broadcast %138 : vector<17x1xf32> to vector<17x17xf32>
    %140 = arith.mulf %135, %139 : vector<17x17xf32>
    %cst_64 = arith.constant dense<0.000000e+00> : vector<17x32xf32>
    %141 = tpu.matmul %140, %125, %cst_64 {dimension_numbers = #tpu.dot_dimension_numbers<[1], [0], [0], [1], [0, 0, 1, 1], [], []>} : vector<17x17xf32>, vector<17x32xf32>, vector<17x32xf32> -> vector<17x32xf32>
    %142 = arith.addf %116, %141 : vector<17x32xf32>
    %c0_65 = arith.constant 0 : index
    %c0_66 = arith.constant 0 : index
    %c0_67 = arith.constant 0 : index
    %143 = vector.load %arg7[%c0_65, %c0_66, %c0_67] : memref<1x32x32xf32, #tpu.memory_space<vmem>>, vector<1x32x32xf32>
    %144 = vector.shape_cast %143 : vector<1x32x32xf32> to vector<32x32xf32>
    %cst_68 = arith.constant dense<0.000000e+00> : vector<17x32xf32>
    %145 = tpu.matmul %142, %144, %cst_68 {dimension_numbers = #tpu.dot_dimension_numbers<[1], [0], [0], [1], [0, 0, 1, 1], [], []>} : vector<17x32xf32>, vector<32x32xf32>, vector<17x32xf32> -> vector<17x32xf32>
    %c0_69 = arith.constant 0 : index
    %c0_70 = arith.constant 0 : index
    %c0_71 = arith.constant 0 : index
    %146 = vector.load %arg8[%c0_69, %c0_70, %c0_71] : memref<1x1x32xf32, #tpu.memory_space<vmem>>, vector<1x1x32xf32>
    %147 = vector.shape_cast %146 : vector<1x1x32xf32> to vector<1x32xf32>
    %148 = vector.broadcast %147 : vector<1x32xf32> to vector<17x32xf32>
    %149 = arith.addf %145, %148 : vector<17x32xf32>
    %cst_72 = arith.constant 0.000000e+00 : f32
    %150 = vector.broadcast %cst_72 : f32 to vector<17x32xf32>
    %151 = arith.maximumf %149, %150 : vector<17x32xf32>
    %c0_73 = arith.constant 0 : index
    %c0_74 = arith.constant 0 : index
    %c0_75 = arith.constant 0 : index
    %152 = vector.load %arg9[%c0_73, %c0_74, %c0_75] : memref<1x32x32xf32, #tpu.memory_space<vmem>>, vector<1x32x32xf32>
    %153 = vector.shape_cast %152 : vector<1x32x32xf32> to vector<32x32xf32>
    %cst_76 = arith.constant dense<0.000000e+00> : vector<17x32xf32>
    %154 = tpu.matmul %151, %153, %cst_76 {dimension_numbers = #tpu.dot_dimension_numbers<[1], [0], [0], [1], [0, 0, 1, 1], [], []>} : vector<17x32xf32>, vector<32x32xf32>, vector<17x32xf32> -> vector<17x32xf32>
    %c0_77 = arith.constant 0 : index
    %c0_78 = arith.constant 0 : index
    %c0_79 = arith.constant 0 : index
    %155 = vector.load %arg10[%c0_77, %c0_78, %c0_79] : memref<1x1x32xf32, #tpu.memory_space<vmem>>, vector<1x1x32xf32>
    %156 = vector.shape_cast %155 : vector<1x1x32xf32> to vector<1x32xf32>
    %157 = vector.broadcast %156 : vector<1x32xf32> to vector<17x32xf32>
    %158 = arith.addf %154, %157 : vector<17x32xf32>
    %159 = arith.addf %142, %158 : vector<17x32xf32>
    %cst_80 = arith.constant dense<0.000000e+00> : vector<32xf32>
    %160 = vector.multi_reduction <add>, %159, %cst_80 [0] : vector<17x32xf32> to vector<32xf32>
    %161 = vector.shape_cast %160 : vector<32xf32> to vector<1x32xf32>
    %cst_81 = arith.constant 1.700000e+01 : f32
    %162 = vector.broadcast %cst_81 : f32 to vector<1x32xf32>
    %163 = arith.divf %161, %162 : vector<1x32xf32>
    %164 = tpu.concatenate %163, %6 in 1 : vector<1x32xf32>, vector<1x1xf32> -> vector<1x33xf32>
    %cst_82 = arith.constant dense<0.000000e+00> : vector<1x33xf32>
    %165 = tpu.matmul %164, %2, %cst_82 {dimension_numbers = #tpu.dot_dimension_numbers<[1], [0], [0], [1], [0, 0, 1, 1], [], []>} : vector<1x33xf32>, vector<33x33xf32>, vector<1x33xf32> -> vector<1x33xf32>
    %166 = vector.extract_strided_slice %165 {offsets = [0, 0], sizes = [1, 32], strides = [1, 1]} : vector<1x33xf32> to vector<1x32xf32>
    %167 = vector.extract_strided_slice %165 {offsets = [0, 32], sizes = [1, 1], strides = [1, 1]} : vector<1x33xf32> to vector<1x1xf32>
    %168 = vector.extract_strided_slice %159 {offsets = [8, 0], sizes = [8, 32], strides = [1, 1]} : vector<17x32xf32> to vector<8x32xf32>
    %cst_83 = arith.constant dense<0.000000e+00> : vector<1x8xf32>
    %169 = tpu.matmul %166, %168, %cst_83 {dimension_numbers = #tpu.dot_dimension_numbers<[1], [1], [0], [0], [0, 0, 1, 0], [], []>} : vector<1x32xf32>, vector<8x32xf32>, vector<1x8xf32> -> vector<1x8xf32>
    %170 = math.tanh %169 : vector<1x8xf32>
    %cst_84 = arith.constant 1.000000e+01 : f32
    %171 = vector.broadcast %cst_84 : f32 to vector<1x8xf32>
    %172 = arith.mulf %171, %170 : vector<1x8xf32>
    %173 = vector.extract_strided_slice %4 {offsets = [1, 0], sizes = [1, 8], strides = [1, 1]} : vector<2x8xf32> to vector<1x8xf32>
    %cst_85 = arith.constant 5.000000e-01 : f32
    %174 = vector.broadcast %cst_85 : f32 to vector<1x8xf32>
    %175 = arith.cmpf ogt, %173, %174 : vector<1x8xf32>
    %cst_86 = arith.constant -1.000000e+09 : f32
    %176 = vector.broadcast %cst_86 : f32 to vector<1x8xf32>
    %177 = arith.select %175, %172, %176 : vector<1x8xi1>, vector<1x8xf32>
    %cst_87 = arith.constant dense<0xFF800000> : vector<1xf32>
    %178 = vector.multi_reduction <maximumf>, %177, %cst_87 [1] : vector<1x8xf32> to vector<1xf32>
    %179 = vector.shape_cast %178 : vector<1xf32> to vector<1x1xf32>
    %180 = vector.broadcast %179 : vector<1x1xf32> to vector<1x8xf32>
    %181 = arith.subf %177, %180 : vector<1x8xf32>
    %182 = math.exp %181 : vector<1x8xf32>
    %cst_88 = arith.constant dense<0.000000e+00> : vector<1xf32>
    %183 = vector.multi_reduction <add>, %182, %cst_88 [1] : vector<1x8xf32> to vector<1xf32>
    %184 = vector.shape_cast %183 : vector<1xf32> to vector<1x1xf32>
    %185 = tpu.reciprocal %184 {approx = true} : vector<1x1xf32> -> vector<1x1xf32>
    %186 = vector.broadcast %185 : vector<1x1xf32> to vector<1x8xf32>
    %187 = arith.mulf %182, %186 : vector<1x8xf32>
    %188 = vector.broadcast %179 : vector<1x1xf32> to vector<1x8xf32>
    %189 = arith.subf %177, %188 : vector<1x8xf32>
    %190 = math.log %184 : vector<1x1xf32>
    %191 = vector.broadcast %190 : vector<1x1xf32> to vector<1x8xf32>
    %192 = arith.subf %189, %191 : vector<1x8xf32>
    %193 = arith.mulf %187, %192 : vector<1x8xf32>
    %cst_89 = arith.constant 0.000000e+00 : f32
    %194 = vector.broadcast %cst_89 : f32 to vector<1x8xf32>
    %195 = arith.select %175, %193, %194 : vector<1x8xi1>, vector<1x8xf32>
    %cst_90 = arith.constant dense<0.000000e+00> : vector<1xf32>
    %196 = vector.multi_reduction <add>, %195, %cst_90 [1] : vector<1x8xf32> to vector<1xf32>
    %197 = vector.shape_cast %196 : vector<1xf32> to vector<1x1xf32>
    %cst_91 = arith.constant 0.000000e+00 : f32
    %198 = vector.broadcast %cst_91 : f32 to vector<1x1xf32>
    %199 = arith.subf %198, %197 : vector<1x1xf32>
    %200 = tpu.concatenate %187, %199, %167 in 1 : vector<1x8xf32>, vector<1x1xf32>, vector<1x1xf32> -> vector<1x10xf32>
    %201 = tpu.concatenate %103, %200 in 0 : vector<1x10xf32>, vector<1x10xf32> -> vector<2x10xf32>
    %c0_92 = arith.constant 0 : index
    %c0_93 = arith.constant 0 : index
    %202 = vector.load %arg12[%c0_92, %c0_93] : memref<2x10xf32, #tpu.memory_space<vmem>>, vector<2x10xf32>
    tpu.vector_store %arg12[%c0_92, %c0_93], %201 {strides = array<i32>} : memref<2x10xf32, #tpu.memory_space<vmem>>, vector<2x10xf32>,
    return
  }
  func.func @transform_0(%arg0: i32) -> (i32, i32, i32) {
    %c0_i32 = arith.constant 0 : i32
    %c0_i32_0 = arith.constant 0 : i32
    %c0_i32_1 = arith.constant 0 : i32
    return %arg0, %c0_i32, %c0_i32_0 : i32, i32, i32
  }
  func.func @transform_1(%arg0: i32) -> (i32, i32) {
    %c0_i32 = arith.constant 0 : i32
    %c0_i32_0 = arith.constant 0 : i32
    return %arg0, %c0_i32 : i32, i32
  }
  func.func @transform_2(%arg0: i32) -> (i32, i32) {
    %c0_i32 = arith.constant 0 : i32
    %c0_i32_0 = arith.constant 0 : i32
    return %arg0, %c0_i32 : i32, i32
  }
  func.func @transform_3(%arg0: i32) -> (i32, i32) {
    %c0_i32 = arith.constant 0 : i32
    %c0_i32_0 = arith.constant 0 : i32
    %c0_i32_1 = arith.constant 0 : i32
    return %c0_i32, %c0_i32_0 : i32, i32
  }
  func.func @transform_4(%arg0: i32) -> (i32, i32) {
    %c0_i32 = arith.constant 0 : i32
    %c0_i32_0 = arith.constant 0 : i32
    %c0_i32_1 = arith.constant 0 : i32
    return %c0_i32, %c0_i32_0 : i32, i32
  }
  func.func @transform_5(%arg0: i32) -> (i32, i32, i32) {
    %c0_i32 = arith.constant 0 : i32
    %c0_i32_0 = arith.constant 0 : i32
    %c0_i32_1 = arith.constant 0 : i32
    %c0_i32_2 = arith.constant 0 : i32
    return %c0_i32, %c0_i32_0, %c0_i32_1 : i32, i32, i32
  }
  func.func @transform_6(%arg0: i32) -> (i32, i32, i32) {
    %c0_i32 = arith.constant 0 : i32
    %c0_i32_0 = arith.constant 0 : i32
    %c0_i32_1 = arith.constant 0 : i32
    %c0_i32_2 = arith.constant 0 : i32
    return %c0_i32, %c0_i32_0, %c0_i32_1 : i32, i32, i32
  }
  func.func @transform_7(%arg0: i32) -> (i32, i32, i32) {
    %c0_i32 = arith.constant 0 : i32
    %c0_i32_0 = arith.constant 0 : i32
    %c0_i32_1 = arith.constant 0 : i32
    %c0_i32_2 = arith.constant 0 : i32
    return %c0_i32, %c0_i32_0, %c0_i32_1 : i32, i32, i32
  }
  func.func @transform_8(%arg0: i32) -> (i32, i32, i32) {
    %c0_i32 = arith.constant 0 : i32
    %c0_i32_0 = arith.constant 0 : i32
    %c0_i32_1 = arith.constant 0 : i32
    %c0_i32_2 = arith.constant 0 : i32
    return %c0_i32, %c0_i32_0, %c0_i32_1 : i32, i32, i32
  }
  func.func @transform_9(%arg0: i32) -> (i32, i32, i32) {
    %c0_i32 = arith.constant 0 : i32
    %c0_i32_0 = arith.constant 0 : i32
    %c0_i32_1 = arith.constant 0 : i32
    %c0_i32_2 = arith.constant 0 : i32
    return %c0_i32, %c0_i32_0, %c0_i32_1 : i32, i32, i32
  }
  func.func @transform_10(%arg0: i32) -> (i32, i32) {
    %c0_i32 = arith.constant 0 : i32
    %c0_i32_0 = arith.constant 0 : i32
    %c0_i32_1 = arith.constant 0 : i32
    return %c0_i32, %c0_i32_0 : i32, i32
  }
  func.func @transform_11(%arg0: i32) -> (i32, i32) {
    %c0_i32 = arith.constant 0 : i32
    %c0_i32_0 = arith.constant 0 : i32
    return %arg0, %c0_i32 : i32, i32
  }
}

</mosaic_0001>

<bundles_post_ra>
// kernel: drl_gat_forward.1
= control target key start
LH: loop header
LB: loop body
LE: loop exit
PB: predicated region body
PF: predicated region fallthrough
CT: control target
= control target key end

     0   :  { %vm67_vm0 = vcmask 1040384   ;;  %v2203_v0 = vmov 0.0   ;;  %vm2204_vm1 = vmmov 0   ;;  %vm57_vm2 = vcmask 72704   ;;  %s2790_s3 = inlined_call_operand.vmem [shape: f32[9,96], index: 3, kind: input, shape index: {}]   ;;  %s2791_s0 = inlined_call_operand.vmem [shape: f32[2,17,9], index: 0, kind: input, shape index: {}]   ;;  %s2792_s5 = inlined_call_operand.vmem [shape: f32[1,32,96], index: 5, kind: input, shape index: {}]   ;;  %s2793_s4 = inlined_call_operand.vmem [shape: f32[17,32], index: 4, kind: input, shape index: {}]   ;;  %s2794_s1 = inlined_call_operand.vmem [shape: f32[2,17], index: 1, kind: input, shape index: {}]   ;;  %s2795_s6 = inlined_call_operand.vmem [shape: f32[1,32,32], index: 6, kind: input, shape index: {}]   ;;  %s2796_s8 = inlined_call_operand.vmem [shape: f32[1,32,32], index: 8, kind: input, shape index: {}]   ;;  %s2797_s7 = inlined_call_operand.vmem [shape: f32[1,1,32], index: 7, kind: input, shape index: {}]   ;;  %s2798_s10 = inlined_call_operand.vmem [shape: f32[33,33], index: 10, kind: input, shape index: {}]   ;;  %s2799_s9 = inlined_call_operand.vmem [shape: f32[1,1,32], index: 9, kind: input, shape index: {}]   ;;  %s2800_s2 = inlined_call_operand.vmem [shape: f32[2,8], index: 2, kind: input, shape index: {}]   ;;  %s2801_s11 = inlined_call_operand.vmem [shape: f32[2,10], index: 11, kind: output, shape index: {}]  }
   0x1   :  { %1933 = vmatprep.subr.mxu0 %v2203_v0  ;;  %v2273_v1 = vld [vmem:[%s2790_s3 + $0x8] sm:$0x1]  ;;  %v2278_v2 = vld [vmem:[%s2790_s3] sm:$0xff]  ;;  %1937 = vmatprep.mubr.msk.f32.mxu0 %vm2204_vm1, %v2203_v0  ;;  %v2291_v4 = vld [vmem:[%s2792_s5 + $0x18] sm:$0xff]  ;;  %vm195_vm3 = vcmask 261120   ;;  %v387_v34 = vlaneseq  ;;  %v2206_v38 = vmov 0  }
   0x2   :  { %1934 = vmatpush3.msk.msra.mxu0 %vm67_vm0, %v2273_v1  ;;  %v54_v3 = vld [vmem:[%s2791_s0] sm:$0xff]  ;;  %1946 = vmatprep.subr.mxu1 %v2203_v0  ;;  %v2298_v5 = vld [vmem:[%s2792_s5 + $0x10] sm:$0xff]  ;;  %v55_v6 = vld [vmem:[%s2791_s0 + $0x8] sm:$0xff]  ;;  %vm395_vm6 = vcmask 138240   ;;  %vm402_vm7 = vcmask 131072   ;;  %vm741_vm8 = vcmask 253952  }
   0x3   :  { %1935 = vmatprep.subr.mxu0 %v2203_v0  ;;  %1947 = vmatpush3.msra.mxu1 %v2291_v4  ;;  %v56_v7 = vld [vmem:[%s2791_s0 + $0x10] sm:$0x1]  ;;  %v2325_v8 = vld [vmem:[%s2792_s5 + $0x8] sm:$0xff]  ;;  %v2332_v9 = vld [vmem:[%s2792_s5] sm:$0xff]  ;;  %s2205_s5 = smov 96   ;;  %v2404_v36 = vshrl.u32 %v387_v34, 7 }
   0x4   :  { %1936 = vmatpush3.msra.mxu0 %v2278_v2  ;;  %1948 = vmatprep.subr.mxu1 %v2203_v0  ;;  %v2339_v10 = vld [vmem:[%s2793_s4] sm:$0xff]  ;;  %v2354_v19 = vld [vmem:[%s2793_s4 + $0x8] sm:$0xff]  ;;  %v2368_v24 = vld [vmem:[%s2793_s4 + $0x10] sm:$0x1]  ;;  %vm753_vm9 = vcmask 269312   ;;  %vm910_vm12 = vcmask 57344  }
   0x5   :  { %1938 = vmatmul.mubr.msk.f32.vlgmr.msra.gmra.mxu0 %vm57_vm2, %v54_v3  ;;  %1949 = vmatpush3.msra.mxu1 %v2298_v5  ;;  %v48_v35 = vld [vmem:[%s2794_s1] sm:$0x3]  ;;  %v389_v37 = vsub.s32 0, %v2404_v36  ;;  %s2207_s1 = smov 64   ;;  %vm1748_vm13 = vcmask 58369   ;;  %vm934_vm14 = vcmask 64512  }
   0x6   :  { %1940 = vmatprep.mubr.msk.f32.mxu0 %vm2204_vm1, %v2203_v0  ;;  %1950 = vmatprep.subr.mxu1 %v2203_v0  ;;  %vm190_vm4 = vcmp.gt.f32.partialorder %v48_v35, 0.5  ;;  %vm1776_vm15 = vcmask 74752  }
   0x7   :  { %1954 = vmatprep.mubr.msk.f32.mxu1 %vm2204_vm1, %v2203_v0  ;;  %1963 = vmatprep.subr.mxu0 %v2203_v0  ;;  %v2407_v39 = vsel %vm190_vm4, 1, %v2206_v38 }
   0x8   :  { %1951 = vmatpush3.msra.mxu1 %v2325_v8  ;;  %v390_v40 = vrot.slane %v2407_v39, %v389_v37 }
   0x9   :  { %1941 = vmatmul.mubr.msk.f32.gmra.mxu0 %vm57_vm2, %v55_v6  ;;  %1952 = vmatprep.subr.mxu1 %v2203_v0 }
   0xa   :  { %1943 = vmatprep.mubr.msk.f32.mxu0 %vm2204_vm1, %v2203_v0  ;;  %1953 = vmatpush3.msra.mxu1 %v2332_v9  ;;  %vm391_vm5 = vcmp.eq.s32.totalorder %v390_v40, 1 }
   0xb   :  { %1978 = vmatprep.subr.mxu1 %v2203_v0 }
   0xd   :  { %1944 = vmatmul.mubr.msk.f32.gmra.mxu0 %vm57_vm2, %v56_v7 }
   0xe   :  { %1969 = vmatprep.mubr.msk.f32.mxu0 %vm2204_vm1, %v2203_v0 }
  0xc5   :  { %v137_v11 = vpop.f32.mrf.mxu0 }
  0xc6   :  { %v2342_v12 = vadd.f32 %v137_v11, %v2339_v10 }
  0xc7   :  { %v1939_v13 = vpop.f32.mrf.mxu0 }
  0xc8   :  { %1955 = vmatmul.mubr.msk.f32.vlgmr.msra.gmra.mxu1 %vm195_vm3, %v2342_v12 }
  0xc9   :  { %v142_v14 = vpop.f32.mrf.mxu0  ;;  %1957 = vmatprep.mubr.msk.f32.mxu1 %vm2204_vm1, %v2203_v0 }
  0xcb   :  { %v1942_v15 = vpop.f32.mrf.mxu0 }
  0xcc   :  { %v2431_v15 = vld [vmem:[%s2795_s6 + $0x10] sm:$0xff] }
  0xcd   :  { %v147_v16 = vpop.f32.mrf.mxu0 }
  0xce   :  { %164 = vrot.lane.b32.xlu0 %v147_v16, %s2205_s5 }
  0xcf   :  { %v1945_v17 = vpop.f32.mrf.mxu0 }
  0xd2   :  { %177 = vrot.lane.b32.xlu0 %v142_v14, %s2205_s5  ;;  %v2426_v14 = vld [vmem:[%s2795_s6 + $0x18] sm:$0xff] }
 0x140   :  { %v165_v18 = vpop.permute.xlu0 %164 }
 0x141   :  { %179 = vrot.lane.b32.xlu1 %v165_v18, %s2205_s5 }
 0x144   :  { %v178_v20 = vpop.permute.xlu0 %177 }
 0x145   :  { %v2357_v21 = vadd.f32 %v178_v20, %v2354_v19 }
 0x147   :  { %1958 = vmatmul.mubr.msk.f32.gmra.mxu1 %vm195_vm3, %v2357_v21 }
 0x148   :  { %1960 = vmatprep.mubr.msk.f32.mxu1 %vm2204_vm1, %v2203_v0 }
 0x188   :  { %v2363_v22 = vpop.f32.mrf.mxu1 }
 0x18a   :  { %v1956_v23 = vpop.f32.mrf.mxu1 }
 0x1b3   :  { %v180_v25 = vpop.permute.xlu1 %179 }
 0x1b4   :  { %v2371_v26 = vadd.f32 %v180_v25, %v2368_v24 }
 0x1b6   :  { %1961 = vmatmul.mubr.msk.f32.gmra.mxu1 %vm195_vm3, %v2371_v26 }
 0x1b7   :  { %1984 = vmatprep.mubr.msk.f32.mxu1 %vm2204_vm1, %v2203_v0 }
 0x207   :  { %v2377_v27 = vpop.f32.mrf.mxu1 }
 0x208   :  { %290 = vrot.lane.b32.xlu0 %v2377_v27, %s2205_s5 }
 0x209   :  { %v1959_v28 = vpop.f32.mrf.mxu1 }
 0x276   :  { %v281_v29 = vpop.f32.mrf.mxu1 }
 0x277   :  { %292 = vrot.lane.b32.xlu1 %v281_v29, %s2205_s5 }
 0x278   :  { %v1962_v30 = vpop.f32.mrf.mxu1 }
 0x27a   :  { %v291_v32 = vpop.permute.xlu0 %290 }
 0x27b   :  { %288 = vrot.lane.b32.xlu1 %v2363_v22, %s2205_s5 }
 0x2e9   :  { %v293_v31 = vpop.permute.xlu1 %292 }
 0x2ea   :  { %1964 = vmatpush3.xpose.msk.msra.mxu0 %vm195_vm3, %v293_v31  ;;  %v2451_v31 = vld [vmem:[%s2795_s6 + $0x8] sm:$0xff] }
 0x2eb   :  { %1965 = vmatprep.subr.mxu0 %v2203_v0 }
 0x2ed   :  { %v289_v33 = vpop.permute.xlu1 %288 }
 0x2ee   :  { %1966 = vmatpush3.xpose.msk.msra.mxu0 %vm195_vm3, %v291_v32  ;;  %v2458_v32 = vld [vmem:[%s2795_s6] sm:$0xff] }
 0x2ef   :  { %1967 = vmatprep.subr.mxu0 %v2203_v0 }
 0x2f2   :  { %1968 = vmatpush3.xpose.msk.msra.mxu0 %vm195_vm3, %v289_v33  ;;  %v2465_v33 = vld [vmem:[%s2796_s8 + $0x18] sm:$0xff] }
 0x2f3   :  { %1993 = vmatprep.subr.mxu0 %v2203_v0 }
 0x2f5   :  { %1970 = vmatmul.mubr.msk.f32.vlgmr.msra.gmra.mxu0 %vm195_vm3, %v2363_v22 }
 0x2f6   :  { %1972 = vmatprep.mubr.msk.f32.mxu0 %vm2204_vm1, %v2203_v0  ;;  %1994 = vmatpush3.msra.mxu0 %v2426_v14 }
 0x2f7   :  { %1995 = vmatprep.subr.mxu0 %v2203_v0 }
 0x2f8   :  { %1996 = vmatpush3.msra.mxu0 %v2431_v15 }
 0x2f9   :  { %1973 = vmatmul.mubr.msk.f32.gmra.mxu0 %vm195_vm3, %v2377_v27  ;;  %1997 = vmatprep.subr.mxu0 %v2203_v0 }
 0x2fa   :  { %1975 = vmatprep.mubr.msk.f32.mxu0 %vm2204_vm1, %v2203_v0  ;;  %1998 = vmatpush3.msra.mxu0 %v2451_v31 }
 0x2fb   :  { %1999 = vmatprep.subr.mxu0 %v2203_v0 }
 0x2fc   :  { %2000 = vmatpush3.msra.mxu0 %v2458_v32 }
 0x2fd   :  { %1976 = vmatmul.mubr.msk.f32.gmra.mxu0 %vm195_vm3, %v281_v29  ;;  %2027 = vmatprep.subr.mxu0 %v2203_v0 }
 0x2fe   :  { %2001 = vmatprep.mubr.msk.f32.mxu0 %vm2204_vm1, %v2203_v0 }
 0x3b5   :  { %v372_v41 = vpop.f32.mrf.mxu0 }
 0x3b6   :  { %v392_v42 = vsel %vm391_vm5, %v372_v41, -1e+09 }
 0x3b7   :  { %v1971_v43 = vpop.f32.mrf.mxu0  ;;  %v396_v44 = vsel %vm395_vm6, %v392_v42, -inf }
 0x3b8   :  { %397 = vmax.xlane.f32.xlu0 %v396_v44  ;;  %v2507_v44 = vld [vmem:[%s2796_s8] sm:$0xff] }
 0x3b9   :  { %v377_v45 = vpop.f32.mrf.mxu0 }
 0x3ba   :  { %v393_v46 = vsel %vm391_vm5, %v377_v45, -1e+09  ;;  %v2514_v45 = vld [vmem:[%s2797_s7] ss:$0 sm:$0xff] }
 0x3bb   :  { %v1974_v47 = vpop.f32.mrf.mxu0  ;;  %v399_v48 = vsel %vm395_vm6, %v393_v46, -inf }
 0x3bc   :  { %400 = vmax.xlane.f32.xlu1 %v399_v48 }
 0x3bd   :  { %v382_v49 = vpop.f32.mrf.mxu0 }
 0x3be   :  { %v394_v50 = vsel %vm391_vm5, %v382_v49, -1e+09 }
 0x3bf   :  { %v1977_v51 = vpop.f32.mrf.mxu0  ;;  %v403_v52 = vsel %vm402_vm7, %v394_v50, -inf }
 0x3c0   :  { %404 = vmax.xlane.f32.xlu0 %v403_v52 }
 0x3cd   :  { %434 = vrot.lane.b32.xlu1 %v281_v29, %s2207_s1 }
 0x441   :  { %v398_v53 = vpop.xlane.xlu0 %397 }
 0x442   :  { %v406_v54 = vsub.f32 %v392_v42, %v398_v53 }
 0x444   :  { %v409_v55 = vmul.f32 1.442695, %v406_v54 }
 0x445   :  { %v401_v56 = vpop.xlane.xlu1 %400 }
 0x446   :  { %2163 = vpow2.f32 %v409_v55  ;;  %v407_v57 = vsub.f32 %v393_v46, %v401_v56 }
 0x448   :  { %v411_v58 = vmul.f32 1.442695, %v407_v57 }
 0x449   :  { %v435_v59 = vpop.permute.xlu1 %434  ;;  %v405_v60 = vpop.xlane.xlu0 %404 }
 0x44a   :  { %2165 = vpow2.f32 %v411_v58  ;;  %v408_v61 = vsub.f32 %v394_v50, %v405_v60  ;;  %1979 = vmatpush3.msk.msra.mxu1 %vm67_vm0, %v435_v59  ;;  %v1813_v58 = vld [vmem:[%s2791_s0 + $0x28] sm:$0x1]  ;;  %v2554_v59 = vld [vmem:[%s2798_s10 + $0x20] sm:$0x1]  ;;  %v2562_v60 = vld [vmem:[%s2798_s10 + $0x18] sm:$0xff] }
 0x44b   :  { %1980 = vmatprep.subr.mxu1 %v2203_v0 }
 0x44c   :  { %v413_v62 = vmul.f32 1.442695, %v408_v61  ;;  %v2569_v61 = vld [vmem:[%s2798_s10 + $0x10] sm:$0xff] }
 0x44e   :  { %2167 = vpow2.f32 %v413_v62  ;;  %v2574_v62 = vld [vmem:[%s2798_s10 + $0x8] sm:$0xff] }
 0x453   :  { %v2164_v63 = vpop.eup %2163 }
 0x454   :  { %v415_v3 = vsel %vm395_vm6, %v2164_v63, 0.0 }
 0x455   :  { %416 = vadd.xlane.f32.xlu0 %v415_v3  ;;  %v2590_v3 = vld [vmem:[%s2799_s9] ss:$0 sm:$0xff] }
 0x457   :  { %v2166_v6 = vpop.eup %2165 }
 0x458   :  { %v418_v7 = vsel %vm395_vm6, %v2166_v6, 0.0 }
 0x459   :  { %419 = vadd.xlane.f32.xlu1 %v418_v7 }
 0x45b   :  { %v2168_v11 = vpop.eup %2167 }
 0x45c   :  { %v421_v13 = vsel %vm402_vm7, %v2168_v11, 0.0 }
 0x45d   :  { %422 = vadd.xlane.f32.xlu0 %v421_v13 }
 0x46a   :  { %430 = vrot.lane.b32.xlu1 %v2363_v22, %s2207_s1 }
 0x473   :  { %432 = vrot.lane.b32.xlu0 %v2377_v27, %s2207_s1 }
 0x4de   :  { %v417_v16 = vpop.xlane.xlu0 %416 }
 0x4df   :  { %2169 = vrcp.f32 %v417_v16 }
 0x4e2   :  { %v420_v17 = vpop.xlane.xlu1 %419 }
 0x4e3   :  { %2171 = vrcp.f32 %v420_v17 }
 0x4e6   :  { %v423_v18 = vpop.xlane.xlu0 %422  ;;  %v431_v23 = vpop.permute.xlu1 %430 }
 0x4e7   :  { %2173 = vrcp.f32 %v423_v18 }
 0x4ea   :  { %v433_v20 = vpop.permute.xlu0 %432 }
 0x4eb   :  { %1981 = vmatpush3.msra.mxu1 %v433_v20 }
 0x4ec   :  { %v2170_v22 = vpop.eup %2169  ;;  %1982 = vmatprep.subr.mxu1 %v2203_v0 }
 0x4ed   :  { %v427_v25 = vmul.f32 %v2170_v22, %v2164_v63  ;;  %1983 = vmatpush3.msra.mxu1 %v431_v23  ;;  %v2581_v63 = vld [vmem:[%s2798_s10] sm:$0xff] }
 0x4ee   :  { %2010 = vmatprep.subr.mxu1 %v2203_v0 }
 0x4ef   :  { %1985 = vmatmul.mubr.msk.f32.vlgmr.msra.gmra.mxu1 %vm395_vm6, %v427_v25 }
 0x4f0   :  { %v2172_v27 = vpop.eup %2171  ;;  %1987 = vmatprep.mubr.msk.f32.mxu1 %vm2204_vm1, %v2203_v0  ;;  %2011 = vmatpush3.msra.mxu1 %v2465_v33 }
 0x4f1   :  { %v428_v28 = vmul.f32 %v2172_v27, %v2166_v6  ;;  %2012 = vmatprep.subr.mxu1 %v2203_v0 }
 0x4f3   :  { %1988 = vmatmul.mubr.msk.f32.gmra.mxu1 %vm395_vm6, %v428_v28 }
 0x4f4   :  { %v2174_v29 = vpop.eup %2173  ;;  %1990 = vmatprep.mubr.msk.f32.mxu1 %vm2204_vm1, %v2203_v0 }
 0x4f5   :  { %v429_v30 = vmul.f32 %v2174_v29, %v2168_v11 }
 0x4f7   :  { %1991 = vmatmul.mubr.msk.f32.gmra.mxu1 %vm395_vm6, %v429_v30 }
 0x4f8   :  { %2018 = vmatprep.mubr.msk.f32.mxu1 %vm2204_vm1, %v2203_v0 }
 0x5af   :  { %v515_v34 = vpop.f32.mrf.mxu1 }
 0x5b0   :  { %v2470_v35 = vadd.f32 %v515_v34, %v2342_v12 }
 0x5b1   :  { %v1986_v37 = vpop.f32.mrf.mxu1 }
 0x5b2   :  { %2002 = vmatmul.mubr.msk.f32.vlgmr.msra.gmra.mxu0 %vm195_vm3, %v2470_v35 }
 0x5b3   :  { %v520_v38 = vpop.f32.mrf.mxu1  ;;  %2004 = vmatprep.mubr.msk.f32.mxu0 %vm2204_vm1, %v2203_v0  ;;  %2028 = vmatpush3.msk.msra.mxu0 %vm67_vm0, %v2554_v59 }
 0x5b4   :  { %v2477_v40 = vadd.f32 %v520_v38, %v2357_v21  ;;  %v2493_v21 = vld [vmem:[%s2796_s8 + $0x10] sm:$0xff]  ;;  %2029 = vmatprep.subr.mxu0 %v2203_v0 }
 0x5b5   :  { %v1989_v41 = vpop.f32.mrf.mxu1  ;;  %2013 = vmatpush3.msra.mxu1 %v2493_v21  ;;  %2030 = vmatpush3.msra.mxu0 %v2562_v60 }
 0x5b6   :  { %2005 = vmatmul.mubr.msk.f32.gmra.mxu0 %vm195_vm3, %v2477_v40  ;;  %2014 = vmatprep.subr.mxu1 %v2203_v0 }
 0x5b7   :  { %v525_v42 = vpop.f32.mrf.mxu1  ;;  %2007 = vmatprep.mubr.msk.f32.mxu0 %vm2204_vm1, %v2203_v0  ;;  %2031 = vmatprep.subr.mxu0 %v2203_v0 }
 0x5b8   :  { %v2484_v12 = vadd.f32 %v525_v42, %v2371_v26  ;;  %v2500_v26 = vld [vmem:[%s2796_s8 + $0x8] sm:$0xff]  ;;  %2032 = vmatpush3.msra.mxu0 %v2569_v61 }
 0x5b9   :  { %v1992_v43 = vpop.f32.mrf.mxu1  ;;  %2015 = vmatpush3.msra.mxu1 %v2500_v26  ;;  %2033 = vmatprep.subr.mxu0 %v2203_v0 }
 0x5ba   :  { %2008 = vmatmul.mubr.msk.f32.gmra.mxu0 %vm195_vm3, %v2484_v12  ;;  %2016 = vmatprep.subr.mxu1 %v2203_v0 }
 0x5bb   :  { %2037 = vmatprep.mubr.msk.f32.mxu0 %vm2204_vm1, %v2203_v0  ;;  %2017 = vmatpush3.msra.mxu1 %v2507_v44 }
 0x5bc   :  { %2045 = vmatprep.subr.mxu1 %v2203_v0  ;;  %2034 = vmatpush3.msra.mxu0 %v2574_v62 }
 0x5bd   :  { %2035 = vmatprep.subr.mxu0 %v2203_v0 }
 0x5be   :  { %2036 = vmatpush3.msra.mxu0 %v2581_v63 }
 0x5bf   :  { %2040 = vmatprep.subr.mxu0 %v2203_v0 }
 0x672   :  { %v618_v46 = vpop.f32.mrf.mxu0 }
 0x673   :  { %v619_v47 = vadd.f32 %v2514_v45, %v618_v46 }
 0x674   :  { %v2003_v48 = vpop.f32.mrf.mxu0 }
 0x675   :  { %v632_v49 = vmax.f32 %v619_v47, 0.0 }
 0x676   :  { %v623_v50 = vpop.f32.mrf.mxu0 }
 0x677   :  { %v624_v51 = vadd.f32 %v2514_v45, %v623_v50  ;;  %2019 = vmatmul.mubr.msk.f32.vlgmr.msra.gmra.mxu1 %vm195_vm3, %v632_v49 }
 0x678   :  { %v2006_v52 = vpop.f32.mrf.mxu0  ;;  %2021 = vmatprep.mubr.msk.f32.mxu1 %vm2204_vm1, %v2203_v0  ;;  %2046 = vmatpush3.msk.msra.mxu1 %vm67_vm0, %v2273_v1  ;;  %v1811_v1 = vld [vmem:[%s2791_s0 + $0x18] sm:$0xff] }
 0x679   :  { %v633_v53 = vmax.f32 %v624_v51, 0.0  ;;  %2047 = vmatprep.subr.mxu1 %v2203_v0 }
 0x67a   :  { %v628_v54 = vpop.f32.mrf.mxu0  ;;  %2048 = vmatpush3.msra.mxu1 %v2278_v2  ;;  %v1812_v2 = vld [vmem:[%s2791_s0 + $0x20] sm:$0xff] }
 0x67b   :  { %v629_v55 = vadd.f32 %v2514_v45, %v628_v54  ;;  %2022 = vmatmul.mubr.msk.f32.gmra.mxu1 %vm195_vm3, %v633_v53  ;;  %2075 = vmatprep.subr.mxu1 %v2203_v0 }
 0x67c   :  { %v2009_v56 = vpop.f32.mrf.mxu0  ;;  %2024 = vmatprep.mubr.msk.f32.mxu1 %vm2204_vm1, %v2203_v0 }
 0x67d   :  { %v634_v57 = vmax.f32 %v629_v55, 0.0 }
 0x67f   :  { %2025 = vmatmul.mubr.msk.f32.gmra.mxu1 %vm195_vm3, %v634_v57 }
 0x680   :  { %2049 = vmatprep.mubr.msk.f32.mxu1 %vm2204_vm1, %v2203_v0 }
 0x683   :  { %2050 = vmatmul.mubr.msk.f32.vlgmr.msra.gmra.mxu1 %vm57_vm2, %v1811_v1 }
 0x684   :  { %2052 = vmatprep.mubr.msk.f32.mxu1 %vm2204_vm1, %v2203_v0 }
 0x687   :  { %2053 = vmatmul.mubr.msk.f32.gmra.mxu1 %vm57_vm2, %v1812_v2 }
 0x688   :  { %2055 = vmatprep.mubr.msk.f32.mxu1 %vm2204_vm1, %v2203_v0 }
 0x68b   :  { %2056 = vmatmul.mubr.msk.f32.gmra.mxu1 %vm57_vm2, %v1813_v58 }
 0x68c   :  { %2081 = vmatprep.mubr.msk.f32.mxu1 %vm2204_vm1, %v2203_v0 }
 0x737   :  { %v721_v6 = vpop.f32.mrf.mxu1 }
 0x738   :  { %v722_v11 = vadd.f32 %v2590_v3, %v721_v6 }
 0x739   :  { %v2020_v7 = vpop.f32.mrf.mxu1 }
 0x73a   :  { %v735_v18 = vadd.f32 %v722_v11, %v2470_v35 }
 0x73b   :  { %v726_v13 = vpop.f32.mrf.mxu1 }
 0x73c   :  { %v727_v16 = vadd.f32 %v2590_v3, %v726_v13  ;;  %v738_v28 = vsel %vm195_vm3, %v735_v18, 0.0 }
 0x73d   :  { %v2023_v17 = vpop.f32.mrf.mxu1 }
 0x73e   :  { %v736_v20 = vadd.f32 %v727_v16, %v2477_v40 }
 0x73f   :  { %v731_v22 = vpop.f32.mrf.mxu1 }
 0x740   :  { %v739_v23 = vsel %vm195_vm3, %v736_v20, 0.0  ;;  %v732_v25 = vadd.f32 %v2590_v3, %v731_v22 }
 0x741   :  { %v2026_v27 = vpop.f32.mrf.mxu1  ;;  %v740_v30 = vadd.f32 %v739_v23, %v738_v28 }
 0x742   :  { %v737_v29 = vadd.f32 %v732_v25, %v2484_v12 }
 0x743   :  { %v1016_v34 = vpop.f32.mrf.mxu1 }
 0x744   :  { %v742_v37 = vsel %vm741_vm8, %v737_v29, 0.0  ;;  %v2622_v56 = vadd.f32 %v1016_v34, %v2339_v10 }
 0x745   :  { %v743_v38 = vadd.f32 %v742_v37, %v740_v30  ;;  %v2051_v41 = vpop.f32.mrf.mxu1 }
 0x747   :  { %v744_v35 = vrot.slane %v743_v38, 4  ;;  %v1021_v42 = vpop.f32.mrf.mxu1 }
 0x748   :  { %1050 = vrot.lane.b32.xlu0 %v1021_v42, %s2205_s5 }
 0x749   :  { %v745_v40 = vadd.f32 %v744_v35, %v743_v38  ;;  %v2054_v43 = vpop.f32.mrf.mxu1 }
 0x74b   :  { %v746_v46 = vrot.slane %v745_v40, 2  ;;  %v1026_v47 = vpop.f32.mrf.mxu1 }
 0x74c   :  { %1037 = vrot.lane.b32.xlu1 %v1026_v47, %s2205_s5 }
 0x74d   :  { %v747_v48 = vadd.f32 %v746_v46, %v745_v40  ;;  %v2057_v49 = vpop.f32.mrf.mxu1 }
 0x74e   :  { %v2690_v49 = vld [vmem:[%s2800_s2] sm:$0x3]  ;;  %s2208_s2 = smov 105  }
 0x74f   :  { %v748_v50 = vrot.slane %v747_v48, 1  ;;  %vm908_vm11 = vcmp.gt.f32.partialorder %v2690_v49, 0.5 }
 0x751   :  { %v749_v12 = vadd.f32 %v748_v50, %v747_v48 }
 0x753   :  { %v751_v51 = vmul.f32 0.05882353, %v749_v12 }
 0x755   :  { %v752_v52 = vsel %vm195_vm3, %v751_v51, 1.0 }
 0x756   :  { %2038 = vmatmul.mubr.msk.f32.vlgmr.msra.gmra.mxu0 %vm753_vm9, %v752_v52 }
 0x757   :  { %2041 = vmatpush3.xpose.msk.msra.mxu0 %vm195_vm3, %v736_v20  ;;  %2042 = vmatprep.mubr.msk.f32.mxu0 %vm2204_vm1, %v2203_v0 }
 0x758   :  { %2058 = vmatprep.subr.mxu0 %v2203_v0 }
 0x7ba   :  { %v1051_v57 = vpop.permute.xlu0 %1050 }
 0x7be   :  { %v1038_v53 = vpop.permute.xlu1 %1037 }
 0x7bf   :  { %1052 = vrot.lane.b32.xlu1 %v1038_v53, %s2205_s5 }
 0x816   :  { %v2610_v54 = vpop.f32.mrf.mxu0 }
 0x817   :  { %2043 = vmatmul.mubr.msk.f32.vlgmr.msra.gmra.mxu0 %vm195_vm3, %v2610_v54 }
 0x818   :  { %2059 = vmatpush3.msra.mxu0 %v2291_v4  ;;  %v2039_v55 = vpop.f32.mrf.mxu0  ;;  %2066 = vmatprep.mubr.msk.f32.mxu0 %vm2204_vm1, %v2203_v0  ;;  %v2632_v4 = vadd.f32 %v1051_v57, %v2354_v19 }
 0x819   :  { %2060 = vmatprep.subr.mxu0 %v2203_v0 }
 0x81a   :  { %2061 = vmatpush3.msra.mxu0 %v2298_v5 }
 0x81b   :  { %2062 = vmatprep.subr.mxu0 %v2203_v0 }
 0x81c   :  { %2063 = vmatpush3.msra.mxu0 %v2325_v8 }
 0x81d   :  { %2064 = vmatprep.subr.mxu0 %v2203_v0 }
 0x81e   :  { %2065 = vmatpush3.msra.mxu0 %v2332_v9 }
 0x81f   :  { %2067 = vmatmul.mubr.msk.f32.vlgmr.msra.gmra.mxu0 %vm195_vm3, %v2622_v56  ;;  %2090 = vmatprep.subr.mxu0 %v2203_v0 }
 0x820   :  { %2069 = vmatprep.mubr.msk.f32.mxu0 %vm2204_vm1, %v2203_v0 }
 0x823   :  { %2070 = vmatmul.mubr.msk.f32.gmra.mxu0 %vm195_vm3, %v2632_v4 }
 0x824   :  { %2072 = vmatprep.mubr.msk.f32.mxu0 %vm2204_vm1, %v2203_v0 }
 0x831   :  { %v1053_v5 = vpop.permute.xlu1 %1052 }
 0x832   :  { %v2639_v8 = vadd.f32 %v1053_v5, %v2368_v24 }
 0x834   :  { %2073 = vmatmul.mubr.msk.f32.gmra.mxu0 %vm195_vm3, %v2639_v8 }
 0x835   :  { %2096 = vmatprep.mubr.msk.f32.mxu0 %vm2204_vm1, %v2203_v0 }
 0x8d7   :  { %v2645_v9 = vpop.f32.mrf.mxu0 }
 0x8d9   :  { %v2044_v10 = vpop.f32.mrf.mxu0 }
 0x8df   :  { %v2647_v19 = vpop.f32.mrf.mxu0 }
 0x8e1   :  { %v2068_v1 = vpop.f32.mrf.mxu0 }
 0x8e3   :  { %v1143_v2 = vpop.f32.mrf.mxu0 }
 0x8e4   :  { %1157 = vrot.lane.b32.xlu1 %v1143_v2, %s2205_s5 }
 0x8e5   :  { %v2071_v58 = vpop.f32.mrf.mxu0 }
 0x8f4   :  { %v1148_v6 = vpop.f32.mrf.mxu0 }
 0x8f5   :  { %1159 = vrot.lane.b32.xlu0 %v1148_v6, %s2205_s5 }
 0x8f6   :  { %v2074_v24 = vpop.f32.mrf.mxu0 }
 0x8f9   :  { %1155 = vrot.lane.b32.xlu0 %v2647_v19, %s2205_s5 }
 0x956   :  { %v1158_v11 = vpop.permute.xlu1 %1157 }
 0x967   :  { %v1160_v7 = vpop.permute.xlu0 %1159 }
 0x968   :  { %2076 = vmatpush3.xpose.msk.msra.mxu1 %vm195_vm3, %v1160_v7 }
 0x969   :  { %2077 = vmatprep.subr.mxu1 %v2203_v0 }
 0x96b   :  { %v1156_v13 = vpop.permute.xlu0 %1155 }
 0x96c   :  { %2078 = vmatpush3.xpose.msk.msra.mxu1 %vm195_vm3, %v1158_v11 }
 0x96d   :  { %2079 = vmatprep.subr.mxu1 %v2203_v0 }
 0x970   :  { %2080 = vmatpush3.xpose.msk.msra.mxu1 %vm195_vm3, %v1156_v13 }
 0x971   :  { %2105 = vmatprep.subr.mxu1 %v2203_v0 }
 0x973   :  { %2082 = vmatmul.mubr.msk.f32.vlgmr.msra.gmra.mxu1 %vm195_vm3, %v2647_v19 }
 0x974   :  { %2084 = vmatprep.mubr.msk.f32.mxu1 %vm2204_vm1, %v2203_v0  ;;  %2106 = vmatpush3.msra.mxu1 %v2426_v14  ;;  %v1255_v14 = vsub.s32 1, %v2404_v36 }
 0x975   :  { %2107 = vmatprep.subr.mxu1 %v2203_v0 }
 0x976   :  { %2108 = vmatpush3.msra.mxu1 %v2431_v15  ;;  %v1256_v15 = vrot.slane %v2407_v39, %v1255_v14 }
 0x977   :  { %2085 = vmatmul.mubr.msk.f32.gmra.mxu1 %vm195_vm3, %v1143_v2  ;;  %2109 = vmatprep.subr.mxu1 %v2203_v0 }
 0x978   :  { %2087 = vmatprep.mubr.msk.f32.mxu1 %vm2204_vm1, %v2203_v0  ;;  %2110 = vmatpush3.msra.mxu1 %v2451_v31  ;;  %vm1257_vm10 = vcmp.eq.s32.totalorder %v1256_v15, 1 }
 0x979   :  { %2111 = vmatprep.subr.mxu1 %v2203_v0 }
 0x97a   :  { %2112 = vmatpush3.msra.mxu1 %v2458_v32 }
 0x97b   :  { %2088 = vmatmul.mubr.msk.f32.gmra.mxu1 %vm195_vm3, %v1148_v6  ;;  %2139 = vmatprep.subr.mxu1 %v2203_v0 }
 0x97c   :  { %2113 = vmatprep.mubr.msk.f32.mxu1 %vm2204_vm1, %v2203_v0 }
 0xa33   :  { %v1239_v16 = vpop.f32.mrf.mxu1 }
 0xa34   :  { %v1258_v17 = vsel %vm1257_vm10, %v1239_v16, -1e+09 }
 0xa35   :  { %v2083_v18 = vpop.f32.mrf.mxu1  ;;  %v1261_v31 = vsel %vm395_vm6, %v1258_v17, -inf }
 0xa36   :  { %1262 = vmax.xlane.f32.xlu1 %v1261_v31 }
 0xa37   :  { %v1244_v20 = vpop.f32.mrf.mxu1 }
 0xa38   :  { %v1259_v32 = vsel %vm1257_vm10, %v1244_v20, -1e+09 }
 0xa39   :  { %v2086_v22 = vpop.f32.mrf.mxu1  ;;  %v1264_v23 = vsel %vm395_vm6, %v1259_v32, -inf }
 0xa3a   :  { %1265 = vmax.xlane.f32.xlu0 %v1264_v23 }
 0xa3b   :  { %v1249_v25 = vpop.f32.mrf.mxu1 }
 0xa3c   :  { %v1260_v27 = vsel %vm1257_vm10, %v1249_v25, -1e+09 }
 0xa3d   :  { %v2089_v28 = vpop.f32.mrf.mxu1  ;;  %v1267_v36 = vsel %vm402_vm7, %v1260_v27, -inf }
 0xa3e   :  { %1268 = vmax.xlane.f32.xlu0 %v1267_v36 }
 0xabf   :  { %v1263_v39 = vpop.xlane.xlu1 %1262 }
 0xac0   :  { %v1270_v29 = vsub.f32 %v1258_v17, %v1263_v39 }
 0xac2   :  { %v1273_v30 = vmul.f32 1.442695, %v1270_v29 }
 0xac3   :  { %v1266_v34 = vpop.xlane.xlu0 %1265 }
 0xac4   :  { %2175 = vpow2.f32 %v1273_v30  ;;  %v1271_v37 = vsub.f32 %v1259_v32, %v1266_v34 }
 0xac6   :  { %v1275_v38 = vmul.f32 1.442695, %v1271_v37 }
 0xac7   :  { %v1269_v43 = vpop.xlane.xlu0 %1268 }
 0xac8   :  { %2177 = vpow2.f32 %v1275_v38  ;;  %v1272_v46 = vsub.f32 %v1260_v27, %v1269_v43 }
 0xac9   :  { %2179 = vtanh.f32 %v2645_v9 }
 0xaca   :  { %v1277_v47 = vmul.f32 1.442695, %v1272_v46 }
 0xacc   :  { %2181 = vpow2.f32 %v1277_v47 }
 0xad1   :  { %v2176_v41 = vpop.eup %2175 }
 0xad2   :  { %v1279_v35 = vsel %vm395_vm6, %v2176_v41, 0.0 }
 0xad3   :  { %1280 = vadd.xlane.f32.xlu1 %v1279_v35 }
 0xad5   :  { %v2178_v42 = vpop.eup %2177 }
 0xad6   :  { %v1282_v40 = vsel %vm395_vm6, %v2178_v42, 0.0  ;;  %v2180_v48 = vpop.eup %2179 }
 0xad7   :  { %1283 = vadd.xlane.f32.xlu0 %v1282_v40  ;;  %v907_v12 = vmul.f32 10.0, %v2180_v48 }
 0xad9   :  { %v2182_v50 = vpop.eup %2181  ;;  %v909_v52 = vsel %vm908_vm11, %v907_v12, -1e+09 }
 0xada   :  { %v1285_v51 = vsel %vm402_vm7, %v2182_v50, 0.0  ;;  %v911_v53 = vsel %vm910_vm12, %v909_v52, -inf }
 0xae4   :  { %1296 = vrot.lane.b32.xlu1 %v1143_v2, %s2207_s1 }
 0xaed   :  { %1298 = vrot.lane.b32.xlu0 %v1148_v6, %s2207_s1 }
 0xb08   :  { %1286 = vadd.xlane.f32.xlu1 %v1285_v51 }
 0xb0c   :  { %912 = vmax.xlane.f32.xlu0 %v911_v53 }
 0xb19   :  { %1294 = vrot.lane.b32.xlu1 %v2647_v19, %s2207_s1 }
 0xb5c   :  { %v1281_v55 = vpop.xlane.xlu1 %1280 }
 0xb5d   :  { %2183 = vrcp.f32 %v1281_v55 }
 0xb60   :  { %v1284_v57 = vpop.xlane.xlu0 %1283  ;;  %v1297_v9 = vpop.permute.xlu1 %1296 }
 0xb61   :  { %2185 = vrcp.f32 %v1284_v57 }
 0xb64   :  { %v1299_v5 = vpop.permute.xlu0 %1298 }
 0xb65   :  { %2091 = vmatpush3.msk.msra.mxu0 %vm67_vm0, %v1299_v5 }
 0xb66   :  { %2092 = vmatprep.subr.mxu0 %v2203_v0 }
 0xb67   :  { %2093 = vmatpush3.msra.mxu0 %v1297_v9 }
 0xb68   :  { %2094 = vmatprep.subr.mxu0 %v2203_v0 }
 0xb6a   :  { %v2184_v1 = vpop.eup %2183 }
 0xb6b   :  { %v1291_v2 = vmul.f32 %v2184_v1, %v2176_v41 }
 0xb6e   :  { %v2186_v19 = vpop.eup %2185 }
 0xb6f   :  { %v1292_v11 = vmul.f32 %v2186_v19, %v2178_v42 }
 0xb91   :  { %v1287_v10 = vpop.xlane.xlu1 %1286 }
 0xb92   :  { %2187 = vrcp.f32 %v1287_v10 }
 0xb95   :  { %v1295_v58 = vpop.permute.xlu1 %1294  ;;  %v913_v6 = vpop.xlane.xlu0 %912 }
 0xb96   :  { %v2702_v24 = vsub.f32 %v909_v52, %v913_v6  ;;  %2095 = vmatpush3.msra.mxu0 %v1295_v58 }
 0xb97   :  { %2097 = vmatmul.mubr.msk.f32.vlgmr.msra.gmra.mxu0 %vm395_vm6, %v1291_v2  ;;  %2122 = vmatprep.subr.mxu0 %v2203_v0 }
 0xb98   :  { %v915_v7 = vmul.f32 1.442695, %v2702_v24  ;;  %2099 = vmatprep.mubr.msk.f32.mxu0 %vm2204_vm1, %v2203_v0  ;;  %2123 = vmatpush3.msra.mxu0 %v2465_v33 }
 0xb99   :  { %2124 = vmatprep.subr.mxu0 %v2203_v0 }
 0xb9a   :  { %2189 = vpow2.f32 %v915_v7  ;;  %2125 = vmatpush3.msra.mxu0 %v2493_v21 }
 0xb9b   :  { %2100 = vmatmul.mubr.msk.f32.gmra.mxu0 %vm395_vm6, %v1292_v11  ;;  %2126 = vmatprep.subr.mxu0 %v2203_v0 }
 0xb9c   :  { %2102 = vmatprep.mubr.msk.f32.mxu0 %vm2204_vm1, %v2203_v0  ;;  %2127 = vmatpush3.msra.mxu0 %v2500_v26 }
 0xb9d   :  { %2128 = vmatprep.subr.mxu0 %v2203_v0 }
 0xb9e   :  { %2129 = vmatpush3.msra.mxu0 %v2507_v44 }
 0xb9f   :  { %v2188_v33 = vpop.eup %2187 }
 0xba0   :  { %v1293_v13 = vmul.f32 %v2188_v33, %v2182_v50 }
 0xba2   :  { %2103 = vmatmul.mubr.msk.f32.gmra.mxu0 %vm395_vm6, %v1293_v13 }
 0xba3   :  { %2130 = vmatprep.mubr.msk.f32.mxu0 %vm2204_vm1, %v2203_v0 }
 0xba7   :  { %v2722_v21 = vpop.eup %2189 }
 0xba8   :  { %v917_v14 = vsel %vm910_vm12, %v2722_v21, 0.0 }
 0xba9   :  { %918 = vadd.xlane.f32.xlu0 %v917_v14 }
 0xc32   :  { %v919_v10 = vpop.xlane.xlu0 %918 }
 0xc33   :  { %2191 = vlog2.f32 %v919_v10 }
 0xc34   :  { %2193 = vrcp.f32 %v919_v10 }
 0xc40   :  { %v2192_v58 = vpop.eup %2191 }
 0xc41   :  { %v923_v6 = vmul.f32 0.6931472, %v2192_v58  ;;  %v2194_v19 = vpop.eup %2193 }
 0xc42   :  { %v921_v13 = vmul.f32 %v2194_v19, %v2722_v21 }
 0xc43   :  { %v924_v7 = vsub.f32 %v2702_v24, %v923_v6 }
 0xc45   :  { %v925_v14 = vmul.f32 %v924_v7, %v921_v13 }
 0xc57   :  { %v1379_v15 = vpop.f32.mrf.mxu0 }
 0xc58   :  { %v1393_v26 = vadd.f32 %v1379_v15, %v2622_v56 }
 0xc59   :  { %v2098_v16 = vpop.f32.mrf.mxu0 }
 0xc5a   :  { %2114 = vmatmul.mubr.msk.f32.vlgmr.msra.gmra.mxu1 %vm195_vm3, %v1393_v26  ;;  %v926_v16 = vsel %vm908_vm11, %v925_v14, 0.0 }
 0xc5b   :  { %v1384_v44 = vpop.f32.mrf.mxu0  ;;  %2116 = vmatprep.mubr.msk.f32.mxu1 %vm2204_vm1, %v2203_v0  ;;  %2140 = vmatpush3.msk.msra.mxu1 %vm67_vm0, %v2554_v59 }
 0xc5c   :  { %v1394_v17 = vadd.f32 %v1384_v44, %v2632_v4  ;;  %2141 = vmatprep.subr.mxu1 %v2203_v0  ;;  %v927_v44 = vsel %vm910_vm12, %v926_v16, 0.0 }
 0xc5d   :  { %v2101_v18 = vpop.f32.mrf.mxu0  ;;  %2142 = vmatpush3.msra.mxu1 %v2562_v60 }
 0xc5e   :  { %2117 = vmatmul.mubr.msk.f32.gmra.mxu1 %vm195_vm3, %v1394_v17  ;;  %2143 = vmatprep.subr.mxu1 %v2203_v0 }
 0xc5f   :  { %2119 = vmatprep.mubr.msk.f32.mxu1 %vm2204_vm1, %v2203_v0  ;;  %2144 = vmatpush3.msra.mxu1 %v2569_v61 }
 0xc60   :  { %2145 = vmatprep.subr.mxu1 %v2203_v0 }
 0xc61   :  { %2146 = vmatpush3.msra.mxu1 %v2574_v62 }
 0xc62   :  { %v1389_v59 = vpop.f32.mrf.mxu0  ;;  %2147 = vmatprep.subr.mxu1 %v2203_v0 }
 0xc63   :  { %v1395_v56 = vadd.f32 %v1389_v59, %v2639_v8  ;;  %2148 = vmatpush3.msra.mxu1 %v2581_v63 }
 0xc64   :  { %v2104_v60 = vpop.f32.mrf.mxu0  ;;  %2152 = vmatprep.subr.mxu1 %v2203_v0 }
 0xc65   :  { %2120 = vmatmul.mubr.msk.f32.gmra.mxu1 %vm195_vm3, %v1395_v56 }
 0xc66   :  { %2149 = vmatprep.mubr.msk.f32.mxu1 %vm2204_vm1, %v2203_v0 }
 0xd1a   :  { %v1471_v61 = vpop.f32.mrf.mxu1 }
 0xd1b   :  { %v1472_v4 = vadd.f32 %v2514_v45, %v1471_v61 }
 0xd1c   :  { %v2115_v31 = vpop.f32.mrf.mxu1 }
 0xd1d   :  { %v1485_v62 = vmax.f32 %v1472_v4, 0.0 }
 0xd1e   :  { %v1476_v20 = vpop.f32.mrf.mxu1 }
 0xd1f   :  { %v1477_v32 = vadd.f32 %v2514_v45, %v1476_v20  ;;  %2131 = vmatmul.mubr.msk.f32.vlgmr.msra.gmra.mxu0 %vm195_vm3, %v1485_v62 }
 0xd20   :  { %v2118_v8 = vpop.f32.mrf.mxu1  ;;  %2133 = vmatprep.mubr.msk.f32.mxu0 %vm2204_vm1, %v2203_v0 }
 0xd21   :  { %v1486_v63 = vmax.f32 %v1477_v32, 0.0 }
 0xd23   :  { %2134 = vmatmul.mubr.msk.f32.gmra.mxu0 %vm195_vm3, %v1486_v63 }
 0xd24   :  { %2136 = vmatprep.mubr.msk.f32.mxu0 %vm2204_vm1, %v2203_v0 }
 0xd25   :  { %v1481_v22 = vpop.f32.mrf.mxu1 }
 0xd26   :  { %v1482_v23 = vadd.f32 %v2514_v45, %v1481_v22 }
 0xd27   :  { %v2121_v25 = vpop.f32.mrf.mxu1 }
 0xd28   :  { %v1487_v27 = vmax.f32 %v1482_v23, 0.0 }
 0xd2a   :  { %2137 = vmatmul.mubr.msk.f32.gmra.mxu0 %vm195_vm3, %v1487_v27 }
 0xddf   :  { %v1563_v28 = vpop.f32.mrf.mxu0 }
 0xde0   :  { %v1564_v30 = vadd.f32 %v2590_v3, %v1563_v28 }
 0xde1   :  { %v2132_v36 = vpop.f32.mrf.mxu0 }
 0xde2   :  { %v1577_v38 = vadd.f32 %v1564_v30, %v1393_v26 }
 0xde3   :  { %v1568_v39 = vpop.f32.mrf.mxu0 }
 0xde4   :  { %v1569_v29 = vadd.f32 %v2590_v3, %v1568_v39  ;;  %v1580_v40 = vsel %vm195_vm3, %v1577_v38, 0.0 }
 0xde5   :  { %v2135_v34 = vpop.f32.mrf.mxu0 }
 0xde6   :  { %v1578_v37 = vadd.f32 %v1569_v29, %v1394_v17 }
 0xde8   :  { %v1581_v35 = vsel %vm195_vm3, %v1578_v37, 0.0 }
 0xde9   :  { %v1582_v46 = vadd.f32 %v1581_v35, %v1580_v40 }
 0xdea   :  { %v1573_v41 = vpop.f32.mrf.mxu0 }
 0xdeb   :  { %v1574_v42 = vadd.f32 %v2590_v3, %v1573_v41 }
 0xdec   :  { %v2138_v45 = vpop.f32.mrf.mxu0 }
 0xded   :  { %v1579_v43 = vadd.f32 %v1574_v42, %v1395_v56 }
 0xdef   :  { %v1583_v47 = vsel %vm741_vm8, %v1579_v43, 0.0 }
 0xdf0   :  { %v1584_v48 = vadd.f32 %v1583_v47, %v1582_v46 }
 0xdf2   :  { %v1585_v50 = vrot.slane %v1584_v48, 4 }
 0xdf4   :  { %v1586_v12 = vadd.f32 %v1585_v50, %v1584_v48 }
 0xdf6   :  { %v1587_v51 = vrot.slane %v1586_v12, 2 }
 0xdf8   :  { %v1588_v52 = vadd.f32 %v1587_v51, %v1586_v12 }
 0xdfa   :  { %v1589_v53 = vrot.slane %v1588_v52, 1 }
 0xdfc   :  { %v1590_v55 = vadd.f32 %v1589_v53, %v1588_v52 }
 0xdfe   :  { %v1591_v57 = vmul.f32 0.05882353, %v1590_v55 }
 0xe00   :  { %v1592_v5 = vsel %vm195_vm3, %v1591_v57, 1.0 }
 0xe01   :  { %2150 = vmatmul.mubr.msk.f32.vlgmr.msra.gmra.mxu1 %vm753_vm9, %v1592_v5 }
 0xe02   :  { %2153 = vmatpush3.xpose.msk.msra.mxu1 %vm195_vm3, %v1578_v37  ;;  %2154 = vmatprep.mubr.msk.f32.mxu1 %vm2204_vm1, %v2203_v0 }
 0xec1   :  { %v1662_v3 = vpop.f32.mrf.mxu1 }
 0xec2   :  { %2155 = vmatmul.mubr.msk.f32.vlgmr.msra.gmra.mxu1 %vm195_vm3, %v1662_v3  ;;  %v1769_v8 = vrot.slane %v1662_v3, 7 }
 0xec3   :  { %v2151_v9 = vpop.f32.mrf.mxu1 }
 0xf82   :  { %v1738_v1 = vpop.f32.mrf.mxu1 }
 0xf83   :  { %2195 = vtanh.f32 %v1738_v1 }
 0xf84   :  { %v2156_v2 = vpop.f32.mrf.mxu1 }
 0xf90   :  { %v2196_v11 = vpop.eup %2195 }
 0xf91   :  { %v1743_v33 = vmul.f32 10.0, %v2196_v11 }
 0xf93   :  { %v1745_v0 = vrot.slane %v1743_v33, 7 }
 0xf95   :  { %v1747_v15 = vsel %vm908_vm11, %v1745_v0, -1e+09 }
 0xf96   :  { %v1749_v26 = vsel %vm1748_vm13, %v1747_v15, -inf }
 0xf97   :  { %1750 = vmax.xlane.f32.xlu1 %v1749_v26 }
 0xf9b   :  { %928 = vadd.xlane.f32.xlu1 %v927_v44 }
 0xfac   :  { %931 = vrot.lane.b32.xlu1 %v2610_v54, %s2208_s2 }
0x1020   :  { %v1751_v24 = vpop.xlane.xlu1 %1750 }
0x1021   :  { %v1752_v21 = vsub.f32 %v1747_v15, %v1751_v24 }
0x1023   :  { %v1753_v17 = vmul.f32 1.442695, %v1752_v21 }
0x1024   :  { %v929_v63 = vpop.xlane.xlu1 %928 }
0x1025   :  { %2197 = vpow2.f32 %v1753_v17  ;;  %v930_v22 = vsub.f32 0.0, %v929_v63 }
0x1027   :  { %v935_v27 = vsel %vm934_vm14, %v921_v13, %v930_v22 }
0x1028   :  { %v932_v28 = vpop.permute.xlu1 %931 }
0x1029   :  { %v936_v29 = vsel %vm57_vm2, %v935_v27, %v932_v28 }
0x1032   :  { %v2198_v18 = vpop.eup %2197 }
0x1033   :  { %v1755_v59 = vsel %vm1748_vm13, %v2198_v18, 0.0 }
0x1034   :  { %1756 = vadd.xlane.f32.xlu0 %v1755_v59 }
0x10bd   :  { %v1757_v56 = vpop.xlane.xlu0 %1756 }
0x10be   :  { %2199 = vrcp.f32 %v1757_v56 }
0x10bf   :  { %2201 = vlog2.f32 %v1757_v56 }
0x10cb   :  { %v2200_v60 = vpop.eup %2199 }
0x10cc   :  { %v2202_v61 = vpop.eup %2201  ;;  %v1759_v31 = vmul.f32 %v2200_v60, %v2198_v18 }
0x10cd   :  { %v1761_v4 = vmul.f32 0.6931472, %v2202_v61 }
0x10cf   :  { %v1762_v62 = vsub.f32 %v1752_v21, %v1761_v4 }
0x10d1   :  { %v1763_v20 = vmul.f32 %v1762_v62, %v1759_v31 }
0x10d3   :  { %v1764_v54 = vsel %vm908_vm11, %v1763_v20, 0.0 }
0x10d4   :  { %v1765_v32 = vsel %vm1748_vm13, %v1764_v54, 0.0 }
0x10d5   :  { %1766 = vadd.xlane.f32.xlu0 %v1765_v32 }
0x10eb   :  { %1770 = vrot.lane.b32.xlu0 %v1769_v8, %s2208_s2 }
0x115e   :  { %v1767_v23 = vpop.xlane.xlu0 %1766 }
0x115f   :  { %v1768_v25 = vsub.f32 0.0, %v1767_v23 }
0x1161   :  { %v1773_v36 = vsel %vm934_vm14, %v1759_v31, %v1768_v25 }
0x1162   :  { %v1771_v39 = vpop.permute.xlu0 %1770 }
0x1163   :  { %v1774_v49 = vsel %vm57_vm2, %v1773_v36, %v1771_v39 }
0x1164   :  { %v1775_v30 = vsel %vm67_vm0, %v936_v29, %v1774_v49 }
0x1165   :  { %1777 = vst.msk [vmem:[%s2801_s11] sm:$0x3] %vm1776_vm15, %v1775_v30 }

</bundles_post_ra>
